<compile_context>
chip_gen: v5e
topology: v5e:2x2
jax: 0.10.0
libtpu: 0.0.40
codegen_flags: <defaults>
</compile_context>

<pallas_src>
import jax
import jax.numpy as jnp
from jax.experimental import pallas as pl
from jax.experimental.pallas import tpu as pltpu


# ----------------------------------------------------------------------------- kernel
def _mat_generator_kernel(x_ref, m_ref, w_ref, b_ref, o_ref, acc_ref, msum_ref):
    # x_ref:    (TB, TS, H)   input tile (f32 or bf16)
    # m_ref:    (TB, TS)      mask tile (same dtype as x; 0/1 values)
    # w_ref:    (H, D)        projection weight (PyTorch Linear weight transposed)
    # b_ref:    (1, D)        projection bias
    # o_ref:    (TB, D)       output tile (resident across the S axis)
    # acc_ref:  (TB, H) f32   VMEM scratch: running masked feature sum
    # msum_ref: (TB, 1) f32   VMEM scratch: running mask count
    s = pl.program_id(1)

    @pl.when(s == 0)
    def _init():
        acc_ref[...] = jnp.zeros_like(acc_ref)
        msum_ref[...] = jnp.zeros_like(msum_ref)

    x = x_ref[...]                                   # streaming dtype (f32 / bf16)
    m = m_ref[...].astype(x.dtype)                   # (TB, TS)

    # Streaming phase: multiply in the streaming dtype, accumulate in f32.
    xm = x * m[:, :, None]                           # (TB, TS, H)
    acc_ref[...] += jnp.sum(xm, axis=1, dtype=jnp.float32)                   # (TB, H)
    msum_ref[...] += jnp.sum(m, axis=1, keepdims=True, dtype=jnp.float32)    # (TB, 1)

    @pl.when(s == pl.num_programs(1) - 1)
    def _finalize():
        # Exact divide, once per batch tile in the epilogue (off the streaming loop).
        # NOTE: like the PyTorch reference, an all-zero mask row yields inf/nan.
        pooled = acc_ref[...] / msum_ref[...]                                # (TB, H)
        proj = jnp.dot(pooled, w_ref[...].astype(jnp.float32),
                       preferred_element_type=jnp.float32)                  # (TB, D)
        o_ref[...] = (proj + b_ref[...].astype(jnp.float32)).astype(o_ref.dtype)


# ------------------------------------------------------------------- tiling heuristics
def _round_up(n, m):
    return ((n + m - 1) // m) * m


def _vmem_limit_bytes():
    """Per-generation scoped-VMEM request: never ask for the whole physical VMEM."""
    cap = 128 * 1024 * 1024
    try:
        cap = int(pltpu.get_tpu_info().vmem_capacity_bytes)
    except Exception:
        pass
    # 3/4 of physical leaves headroom for Mosaic internal scratch/semaphores
    # (~48 MiB on the 64 MiB v7x part); cap at 64 MiB on the 128 MiB v5e/v6e parts.
    return min(64 * 1024 * 1024, (cap * 3) // 4)


def _estimate_vmem_bytes(tb, ts, H, D, x_bytes):
    """Rough working-set estimate (lane/sublane padded, double-buffered streams)."""
    lane, sub = 128, 8
    Hp, Dp, tbp = _round_up(H, lane), _round_up(D, lane), _round_up(tb, sub)
    xt = tb * _round_up(ts, sub) * Hp * x_bytes * 2        # x tiles, double-buffered
    mt = tbp * _round_up(ts, lane) * x_bytes * 2           # 2D mask tiles
    wt = _round_up(H, sub) * Dp * 4 * 2                    # resident weight (worst case)
    bt = sub * Dp * 4 * 2                                  # resident bias
    ot = tbp * Dp * 4 * 2                                  # output tiles
    sc = tbp * Hp * 4 + tbp * lane * 4                     # f32 accumulators
    return xt + mt + wt + bt + ot + sc


def _pick_ts(S, tb, H, D, x_bytes, budget):
    """Largest S-tile (<=512, multiple of 128 when tiling) whose working set fits."""
    cands = ([S] if S <= 512 else []) + [c for c in (512, 384, 256, 128) if c < S]
    for ts in cands:
        if _estimate_vmem_bytes(tb, ts, H, D, x_bytes) <= budget:
            return ts
    return cands[-1]


# ------------------------------------------------------------------------------ wrapper
def mat_generator(x, mask, w, b, *, tb=None, ts=None):
    """Mean-aggregation MATGenerator forward.

    x:    (B, S, H)       activations (f32 or bf16; stream bf16 when possible)
    mask: (B, S)          padding mask
    w:    (H, D)          nn.Linear weight, transposed
    b:    (D,) or (1, D)  nn.Linear bias
    returns (B, D) f32
    """
    B, S, H = x.shape
    D = w.shape[1]
    x_bytes = jnp.dtype(x.dtype).itemsize

    limit = _vmem_limit_bytes()
    budget = int(limit * 0.85)            # keep the estimate comfortably under the limit

    # Batch tiling: TB=8 when B > 8 so grid[0] >= 2 (both v7x TensorCores get work for
    # B >= 16); tiny batches use the full B as one tile.
    if tb is None:
        tb = B if B <= 8 else 8
    B_pad = _round_up(B, tb)

    # Sequence tiling: derived from the VMEM budget; S is zero-padded to a multiple.
    if ts is None:
        ts = _pick_ts(S, tb, H, D, x_bytes, budget)
    if ts < S and ts % 128 != 0:
        raise ValueError("when ts < S, ts must be a multiple of 128")
    S_pad = _round_up(S, ts)

    mask2 = mask.reshape(B, S).astype(x.dtype)   # 2D, lane-dense, same bytes as x stream
    b2 = b.reshape(1, D)

    x_p, m_p = x, mask2
    if S_pad != S:
        # Zero x / zero mask padding leaves the masked mean unchanged.
        x_p = jnp.pad(x_p, ((0, 0), (0, S_pad - S), (0, 0)))
        m_p = jnp.pad(m_p, ((0, 0), (0, S_pad - S)))
    if B_pad != B:
        x_p = jnp.pad(x_p, ((0, B_pad - B), (0, 0), (0, 0)))
        m_p = jnp.pad(m_p, ((0, B_pad - B), (0, 0)))
        # Give padded rows one "valid" position so their (discarded) mean is not 0/0.
        m_p = m_p.at[B:, 0].set(jnp.asarray(1, m_p.dtype))

    grid = (B_pad // tb, S_pad // ts)

    def _call(const_mode):
        wb = {"pipeline_mode": const_mode} if const_mode is not None else {}
        return pl.pallas_call(
            _mat_generator_kernel,
            out_shape=jax.ShapeDtypeStruct((B_pad, D), jnp.float32),
            grid_spec=pltpu.PrefetchScalarGridSpec(
                num_scalar_prefetch=0,
                grid=grid,
                in_specs=[
                    pl.BlockSpec((tb, ts, H), lambda i, s: (i, s, 0)),
                    pl.BlockSpec((tb, ts), lambda i, s: (i, s)),
                    # Weight / bias: same block every step -> resident, no re-DMA.
                    pl.BlockSpec((H, D), lambda i, s: (0, 0), **wb),
                    pl.BlockSpec((1, D), lambda i, s: (0, 0), **wb),
                ],
                out_specs=pl.BlockSpec((tb, D), lambda i, s: (i, 0)),
                scratch_shapes=[
                    pltpu.VMEM((tb, H), jnp.float32),
                    pltpu.VMEM((tb, 1), jnp.float32),
                ],
            ),
            compiler_params=pltpu.CompilerParams(
                dimension_semantics=("parallel", "arbitrary"),
                vmem_limit_bytes=limit,
            ),
        )(x_p, m_p, w, b2)

    # Prefer single-buffered constant W/b specs (saves ~0.5-1 MiB on the tight v7x
    # budget); fall back cleanly if this JAX build rejects pipeline_mode here.
    try:
        out = _call(pl.Buffered(1))
    except Exception:
        out = _call(None)

    return out[:B] if B_pad != B else out


# ---------------------------------------------------------------------------- reference
def reference(x, mask, w, b):
    m = mask.reshape(x.shape[0], x.shape[1], 1).astype(jnp.float32)
    out_masked = x.astype(jnp.float32) * m
    pooled = out_masked.sum(axis=1) / m.sum(axis=1)
    return pooled @ w + b.reshape(1, -1)


if __name__ == "__main__":
    B, S, H, D = 8, 50, 128, 4   # batch, seq (atoms), hsize, d_output

    key = jax.random.PRNGKey(0)
    kx, km, kw, kb, kx3, km3 = jax.random.split(key, 6)

    x = jax.random.normal(kx, (B, S, H), dtype=jnp.float32)
    mask = (jax.random.uniform(km, (B, S)) > 0.3).astype(jnp.float32)
    mask = mask.at[:, 0].set(1.0)   # guarantee no all-padded row

    # Deterministic nn.Linear-style init: U(-1/sqrt(H), 1/sqrt(H))
    bound = 1.0 / (H ** 0.5)
    w = jax.random.uniform(kw, (H, D), minval=-bound, maxval=bound, dtype=jnp.float32)
    b = jax.random.uniform(kb, (D,), minval=-bound, maxval=bound, dtype=jnp.float32)

    ref = reference(x, mask, w, b)

    # 1) f32 streaming path
    out = mat_generator(x, mask, w, b)
    jax.block_until_ready(out)
    assert out.shape == (B, D)
    assert jnp.allclose(out, ref, atol=1e-4, rtol=1e-4), "f32 mismatch vs reference"

    # 2) bf16 streaming path (halves HBM bytes on the x stream; f32 accumulation in-kernel)
    out_bf16 = mat_generator(x.astype(jnp.bfloat16), mask, w, b)
    jax.block_until_ready(out_bf16)
    assert jnp.allclose(out_bf16, ref, atol=2e-2, rtol=2e-2), "bf16 mismatch vs reference"

    # 3) padded-S path: S not a multiple of the forced tile; wrapper zero-pads S.
    S3 = 200
    x3 = jax.random.normal(kx3, (B, S3, H), dtype=jnp.float32)
    mask3 = (jax.random.uniform(km3, (B, S3)) > 0.3).astype(jnp.float32)
    mask3 = mask3.at[:, 0].set(1.0)
    out3 = mat_generator(x3, mask3, w, b, ts=128)
    jax.block_until_ready(out3)
    assert jnp.allclose(out3, reference(x3, mask3, w, b), atol=1e-4, rtol=1e-4), \
        "padded-S mismatch vs reference"

    print("KERNEL_OK")
</pallas_src>

<mosaic_0001>
module attributes {stable_mosaic.version = 11 : i64} {
  func.func @_mat_generator_kernel(%arg0: i32, %arg1: i32, %arg2: memref<8x50x128xf32, #tpu.memory_space<vmem>>, %arg3: memref<8x50xf32, #tpu.memory_space<vmem>>, %arg4: memref<128x4xf32, #tpu.memory_space<vmem>>, %arg5: memref<1x4xf32, #tpu.memory_space<vmem>>, %arg6: memref<8x4xf32, #tpu.memory_space<vmem>>, %arg7: memref<8x128xf32, #tpu.memory_space<vmem>>, %arg8: memref<8x1xf32, #tpu.memory_space<vmem>>) attributes {dimension_semantics = [#tpu.dimension_semantics<parallel>, #tpu.dimension_semantics<arbitrary>], iteration_bounds = array<i64: 1, 1>, scalar_prefetch = 0 : i64, scratch_operands = 2 : i64, tpu.core_type = #tpu.core_type<tc>, window_params = [{transform_indices = @transform_0, window_bounds = array<i64: 8, 50, 128>}, {transform_indices = @transform_1, window_bounds = array<i64: 8, 50>}, {pipeline_mode = #tpu.pipeline_mode<synchronous>, transform_indices = @transform_2, window_bounds = array<i64: 128, 4>}, {pipeline_mode = #tpu.pipeline_mode<synchronous>, transform_indices = @transform_3, window_bounds = array<i64: 1, 4>}, {transform_indices = @transform_4, window_bounds = array<i64: 8, 4>}]} {
    %c0_i32 = arith.constant 0 : i32
    %0 = arith.cmpi eq, %arg1, %c0_i32 : i32
    %1 = arith.extui %0 : i1 to i32
    %c0_i32_0 = arith.constant 0 : i32
    %2 = arith.cmpi ne, %1, %c0_i32_0 : i32
    scf.if %2 {
      %cst_16 = arith.constant 0.000000e+00 : f32
      %20 = vector.broadcast %cst_16 : f32 to vector<8x128xf32>
      %c0_17 = arith.constant 0 : index
      %c0_18 = arith.constant 0 : index
      %21 = vector.load %arg7[%c0_17, %c0_18] : memref<8x128xf32, #tpu.memory_space<vmem>>, vector<8x128xf32>
      tpu.vector_store %arg7[%c0_17, %c0_18], %20 {strides = array<i32>} : memref<8x128xf32, #tpu.memory_space<vmem>>, vector<8x128xf32>,
      %cst_19 = arith.constant 0.000000e+00 : f32
      %22 = vector.broadcast %cst_19 : f32 to vector<8x1xf32>
      %c0_20 = arith.constant 0 : index
      %c0_21 = arith.constant 0 : index
      %23 = vector.load %arg8[%c0_20, %c0_21] : memref<8x1xf32, #tpu.memory_space<vmem>>, vector<8x1xf32>
      tpu.vector_store %arg8[%c0_20, %c0_21], %22 {strides = array<i32>} : memref<8x1xf32, #tpu.memory_space<vmem>>, vector<8x1xf32>,
    } else {
    }
    %c0 = arith.constant 0 : index
    %c0_1 = arith.constant 0 : index
    %c0_2 = arith.constant 0 : index
    %3 = vector.load %arg2[%c0, %c0_1, %c0_2] : memref<8x50x128xf32, #tpu.memory_space<vmem>>, vector<8x50x128xf32>
    %c0_3 = arith.constant 0 : index
    %c0_4 = arith.constant 0 : index
    %4 = vector.load %arg3[%c0_3, %c0_4] : memref<8x50xf32, #tpu.memory_space<vmem>>, vector<8x50xf32>
    %5 = vector.shape_cast %4 : vector<8x50xf32> to vector<8x50x1xf32>
    %6 = vector.broadcast %5 : vector<8x50x1xf32> to vector<8x50x128xf32>
    %7 = arith.mulf %3, %6 : vector<8x50x128xf32>
    %c0_5 = arith.constant 0 : index
    %c0_6 = arith.constant 0 : index
    %8 = vector.load %arg7[%c0_5, %c0_6] : memref<8x128xf32, #tpu.memory_space<vmem>>, vector<8x128xf32>
    %cst = arith.constant dense<0.000000e+00> : vector<8x128xf32>
    %9 = vector.multi_reduction <add>, %7, %cst [1] : vector<8x50x128xf32> to vector<8x128xf32>
    %10 = arith.addf %8, %9 : vector<8x128xf32>
    %c0_7 = arith.constant 0 : index
    %c0_8 = arith.constant 0 : index
    %11 = vector.load %arg7[%c0_7, %c0_8] : memref<8x128xf32, #tpu.memory_space<vmem>>, vector<8x128xf32>
    tpu.vector_store %arg7[%c0_7, %c0_8], %10 {strides = array<i32>} : memref<8x128xf32, #tpu.memory_space<vmem>>, vector<8x128xf32>,
    %c0_9 = arith.constant 0 : index
    %c0_10 = arith.constant 0 : index
    %12 = vector.load %arg8[%c0_9, %c0_10] : memref<8x1xf32, #tpu.memory_space<vmem>>, vector<8x1xf32>
    %cst_11 = arith.constant dense<0.000000e+00> : vector<8xf32>
    %13 = vector.multi_reduction <add>, %4, %cst_11 [1] : vector<8x50xf32> to vector<8xf32>
    %14 = vector.shape_cast %13 : vector<8xf32> to vector<8x1xf32>
    %15 = arith.addf %12, %14 : vector<8x1xf32>
    %c0_12 = arith.constant 0 : index
    %c0_13 = arith.constant 0 : index
    %16 = vector.load %arg8[%c0_12, %c0_13] : memref<8x1xf32, #tpu.memory_space<vmem>>, vector<8x1xf32>
    tpu.vector_store %arg8[%c0_12, %c0_13], %15 {strides = array<i32>} : memref<8x1xf32, #tpu.memory_space<vmem>>, vector<8x1xf32>,
    %c0_i32_14 = arith.constant 0 : i32
    %17 = arith.cmpi eq, %arg1, %c0_i32_14 : i32
    %18 = arith.extui %17 : i1 to i32
    %c0_i32_15 = arith.constant 0 : i32
    %19 = arith.cmpi ne, %18, %c0_i32_15 : i32
    scf.if %19 {
      %c0_16 = arith.constant 0 : index
      %c0_17 = arith.constant 0 : index
      %20 = vector.load %arg7[%c0_16, %c0_17] : memref<8x128xf32, #tpu.memory_space<vmem>>, vector<8x128xf32>
      %c0_18 = arith.constant 0 : index
      %c0_19 = arith.constant 0 : index
      %21 = vector.load %arg8[%c0_18, %c0_19] : memref<8x1xf32, #tpu.memory_space<vmem>>, vector<8x1xf32>
      %22 = vector.broadcast %21 : vector<8x1xf32> to vector<8x128xf32>
      %23 = arith.divf %20, %22 : vector<8x128xf32>
      %c0_20 = arith.constant 0 : index
      %c0_21 = arith.constant 0 : index
      %24 = vector.load %arg4[%c0_20, %c0_21] : memref<128x4xf32, #tpu.memory_space<vmem>>, vector<128x4xf32>
      %cst_22 = arith.constant dense<0.000000e+00> : vector<8x4xf32>
      %25 = tpu.matmul %23, %24, %cst_22 {dimension_numbers = #tpu.dot_dimension_numbers<[1], [0], [0], [1], [0, 0, 1, 1], [], []>} : vector<8x128xf32>, vector<128x4xf32>, vector<8x4xf32> -> vector<8x4xf32>
      %c0_23 = arith.constant 0 : index
      %c0_24 = arith.constant 0 : index
      %26 = vector.load %arg5[%c0_23, %c0_24] : memref<1x4xf32, #tpu.memory_space<vmem>>, vector<1x4xf32>
      %27 = vector.broadcast %26 : vector<1x4xf32> to vector<8x4xf32>
      %28 = arith.addf %25, %27 : vector<8x4xf32>
      %c0_25 = arith.constant 0 : index
      %c0_26 = arith.constant 0 : index
      %29 = vector.load %arg6[%c0_25, %c0_26] : memref<8x4xf32, #tpu.memory_space<vmem>>, vector<8x4xf32>
      tpu.vector_store %arg6[%c0_25, %c0_26], %28 {strides = array<i32>} : memref<8x4xf32, #tpu.memory_space<vmem>>, vector<8x4xf32>,
    } else {
    }
    return
  }
  func.func @transform_0(%arg0: i32, %arg1: i32) -> (i32, i32, i32) {
    %c0_i32 = arith.constant 0 : i32
    %c0_i32_0 = arith.constant 0 : i32
    return %arg0, %arg1, %c0_i32 : i32, i32, i32
  }
  func.func @transform_1(%arg0: i32, %arg1: i32) -> (i32, i32) {
    %c0_i32 = arith.constant 0 : i32
    return %arg0, %arg1 : i32, i32
  }
  func.func @transform_2(%arg0: i32, %arg1: i32) -> (i32, i32) {
    %c0_i32 = arith.constant 0 : i32
    %c0_i32_0 = arith.constant 0 : i32
    %c0_i32_1 = arith.constant 0 : i32
    return %c0_i32, %c0_i32_0 : i32, i32
  }
  func.func @transform_3(%arg0: i32, %arg1: i32) -> (i32, i32) {
    %c0_i32 = arith.constant 0 : i32
    %c0_i32_0 = arith.constant 0 : i32
    %c0_i32_1 = arith.constant 0 : i32
    return %c0_i32, %c0_i32_0 : i32, i32
  }
  func.func @transform_4(%arg0: i32, %arg1: i32) -> (i32, i32) {
    %c0_i32 = arith.constant 0 : i32
    %c0_i32_0 = arith.constant 0 : i32
    return %arg0, %c0_i32 : i32, i32
  }
}

module attributes {stable_mosaic.version = 11 : i64} {
  func.func @_mat_generator_kernel(%arg0: i32, %arg1: i32, %arg2: memref<8x50x128xf32, #tpu.memory_space<vmem>>, %arg3: memref<8x50xf32, #tpu.memory_space<vmem>>, %arg4: memref<128x4xf32, #tpu.memory_space<vmem>>, %arg5: memref<1x4xf32, #tpu.memory_space<vmem>>, %arg6: memref<8x4xf32, #tpu.memory_space<vmem>>, %arg7: memref<8x128xf32, #tpu.memory_space<vmem>>, %arg8: memref<8x1xf32, #tpu.memory_space<vmem>>) attributes {dimension_semantics = [#tpu.dimension_semantics<parallel>, #tpu.dimension_semantics<arbitrary>], iteration_bounds = array<i64: 1, 1>, scalar_prefetch = 0 : i64, scratch_operands = 2 : i64, tpu.core_type = #tpu.core_type<tc>, window_params = [{transform_indices = @transform_0, window_bounds = array<i64: 8, 50, 128>}, {transform_indices = @transform_1, window_bounds = array<i64: 8, 50>}, {pipeline_mode = #tpu.pipeline_mode<synchronous>, transform_indices = @transform_2, window_bounds = array<i64: 128, 4>}, {pipeline_mode = #tpu.pipeline_mode<synchronous>, transform_indices = @transform_3, window_bounds = array<i64: 1, 4>}, {transform_indices = @transform_4, window_bounds = array<i64: 8, 4>}]} {
    %c0_i32 = arith.constant 0 : i32
    %0 = arith.cmpi eq, %arg1, %c0_i32 : i32
    %1 = arith.extui %0 : i1 to i32
    %c0_i32_0 = arith.constant 0 : i32
    %2 = arith.cmpi ne, %1, %c0_i32_0 : i32
    scf.if %2 {
      %cst_16 = arith.constant 0.000000e+00 : f32
      %20 = vector.broadcast %cst_16 : f32 to vector<8x128xf32>
      %c0_17 = arith.constant 0 : index
      %c0_18 = arith.constant 0 : index
      %21 = vector.load %arg7[%c0_17, %c0_18] : memref<8x128xf32, #tpu.memory_space<vmem>>, vector<8x128xf32>
      tpu.vector_store %arg7[%c0_17, %c0_18], %20 {strides = array<i32>} : memref<8x128xf32, #tpu.memory_space<vmem>>, vector<8x128xf32>,
      %cst_19 = arith.constant 0.000000e+00 : f32
      %22 = vector.broadcast %cst_19 : f32 to vector<8x1xf32>
      %c0_20 = arith.constant 0 : index
      %c0_21 = arith.constant 0 : index
      %23 = vector.load %arg8[%c0_20, %c0_21] : memref<8x1xf32, #tpu.memory_space<vmem>>, vector<8x1xf32>
      tpu.vector_store %arg8[%c0_20, %c0_21], %22 {strides = array<i32>} : memref<8x1xf32, #tpu.memory_space<vmem>>, vector<8x1xf32>,
    } else {
    }
    %c0 = arith.constant 0 : index
    %c0_1 = arith.constant 0 : index
    %c0_2 = arith.constant 0 : index
    %3 = vector.load %arg2[%c0, %c0_1, %c0_2] : memref<8x50x128xf32, #tpu.memory_space<vmem>>, vector<8x50x128xf32>
    %c0_3 = arith.constant 0 : index
    %c0_4 = arith.constant 0 : index
    %4 = vector.load %arg3[%c0_3, %c0_4] : memref<8x50xf32, #tpu.memory_space<vmem>>, vector<8x50xf32>
    %5 = vector.shape_cast %4 : vector<8x50xf32> to vector<8x50x1xf32>
    %6 = vector.broadcast %5 : vector<8x50x1xf32> to vector<8x50x128xf32>
    %7 = arith.mulf %3, %6 : vector<8x50x128xf32>
    %c0_5 = arith.constant 0 : index
    %c0_6 = arith.constant 0 : index
    %8 = vector.load %arg7[%c0_5, %c0_6] : memref<8x128xf32, #tpu.memory_space<vmem>>, vector<8x128xf32>
    %cst = arith.constant dense<0.000000e+00> : vector<8x128xf32>
    %9 = vector.multi_reduction <add>, %7, %cst [1] : vector<8x50x128xf32> to vector<8x128xf32>
    %10 = arith.addf %8, %9 : vector<8x128xf32>
    %c0_7 = arith.constant 0 : index
    %c0_8 = arith.constant 0 : index
    %11 = vector.load %arg7[%c0_7, %c0_8] : memref<8x128xf32, #tpu.memory_space<vmem>>, vector<8x128xf32>
    tpu.vector_store %arg7[%c0_7, %c0_8], %10 {strides = array<i32>} : memref<8x128xf32, #tpu.memory_space<vmem>>, vector<8x128xf32>,
    %c0_9 = arith.constant 0 : index
    %c0_10 = arith.constant 0 : index
    %12 = vector.load %arg8[%c0_9, %c0_10] : memref<8x1xf32, #tpu.memory_space<vmem>>, vector<8x1xf32>
    %cst_11 = arith.constant dense<0.000000e+00> : vector<8xf32>
    %13 = vector.multi_reduction <add>, %4, %cst_11 [1] : vector<8x50xf32> to vector<8xf32>
    %14 = vector.shape_cast %13 : vector<8xf32> to vector<8x1xf32>
    %15 = arith.addf %12, %14 : vector<8x1xf32>
    %c0_12 = arith.constant 0 : index
    %c0_13 = arith.constant 0 : index
    %16 = vector.load %arg8[%c0_12, %c0_13] : memref<8x1xf32, #tpu.memory_space<vmem>>, vector<8x1xf32>
    tpu.vector_store %arg8[%c0_12, %c0_13], %15 {strides = array<i32>} : memref<8x1xf32, #tpu.memory_space<vmem>>, vector<8x1xf32>,
    %c0_i32_14 = arith.constant 0 : i32
    %17 = arith.cmpi eq, %arg1, %c0_i32_14 : i32
    %18 = arith.extui %17 : i1 to i32
    %c0_i32_15 = arith.constant 0 : i32
    %19 = arith.cmpi ne, %18, %c0_i32_15 : i32
    scf.if %19 {
      %c0_16 = arith.constant 0 : index
      %c0_17 = arith.constant 0 : index
      %20 = vector.load %arg7[%c0_16, %c0_17] : memref<8x128xf32, #tpu.memory_space<vmem>>, vector<8x128xf32>
      %c0_18 = arith.constant 0 : index
      %c0_19 = arith.constant 0 : index
      %21 = vector.load %arg8[%c0_18, %c0_19] : memref<8x1xf32, #tpu.memory_space<vmem>>, vector<8x1xf32>
      %22 = vector.broadcast %21 : vector<8x1xf32> to vector<8x128xf32>
      %23 = arith.divf %20, %22 : vector<8x128xf32>
      %c0_20 = arith.constant 0 : index
      %c0_21 = arith.constant 0 : index
      %24 = vector.load %arg4[%c0_20, %c0_21] : memref<128x4xf32, #tpu.memory_space<vmem>>, vector<128x4xf32>
      %cst_22 = arith.constant dense<0.000000e+00> : vector<8x4xf32>
      %25 = tpu.matmul %23, %24, %cst_22 {dimension_numbers = #tpu.dot_dimension_numbers<[1], [0], [0], [1], [0, 0, 1, 1], [], []>} : vector<8x128xf32>, vector<128x4xf32>, vector<8x4xf32> -> vector<8x4xf32>
      %c0_23 = arith.constant 0 : index
      %c0_24 = arith.constant 0 : index
      %26 = vector.load %arg5[%c0_23, %c0_24] : memref<1x4xf32, #tpu.memory_space<vmem>>, vector<1x4xf32>
      %27 = vector.broadcast %26 : vector<1x4xf32> to vector<8x4xf32>
      %28 = arith.addf %25, %27 : vector<8x4xf32>
      %c0_25 = arith.constant 0 : index
      %c0_26 = arith.constant 0 : index
      %29 = vector.load %arg6[%c0_25, %c0_26] : memref<8x4xf32, #tpu.memory_space<vmem>>, vector<8x4xf32>
      tpu.vector_store %arg6[%c0_25, %c0_26], %28 {strides = array<i32>} : memref<8x4xf32, #tpu.memory_space<vmem>>, vector<8x4xf32>,
    } else {
    }
    return
  }
  func.func @transform_0(%arg0: i32, %arg1: i32) -> (i32, i32, i32) {
    %c0_i32 = arith.constant 0 : i32
    %c0_i32_0 = arith.constant 0 : i32
    return %arg0, %arg1, %c0_i32 : i32, i32, i32
  }
  func.func @transform_1(%arg0: i32, %arg1: i32) -> (i32, i32) {
    %c0_i32 = arith.constant 0 : i32
    return %arg0, %arg1 : i32, i32
  }
  func.func @transform_2(%arg0: i32, %arg1: i32) -> (i32, i32) {
    %c0_i32 = arith.constant 0 : i32
    %c0_i32_0 = arith.constant 0 : i32
    %c0_i32_1 = arith.constant 0 : i32
    return %c0_i32, %c0_i32_0 : i32, i32
  }
  func.func @transform_3(%arg0: i32, %arg1: i32) -> (i32, i32) {
    %c0_i32 = arith.constant 0 : i32
    %c0_i32_0 = arith.constant 0 : i32
    %c0_i32_1 = arith.constant 0 : i32
    return %c0_i32, %c0_i32_0 : i32, i32
  }
  func.func @transform_4(%arg0: i32, %arg1: i32) -> (i32, i32) {
    %c0_i32 = arith.constant 0 : i32
    %c0_i32_0 = arith.constant 0 : i32
    return %arg0, %c0_i32 : i32, i32
  }
}

</mosaic_0001>

<bundles_post_ra>
// kernel: tpu_custom_call.1
= control target key start
LH: loop header
LB: loop body
LE: loop exit
PB: predicated region body
PF: predicated region fallthrough
CT: control target
= control target key end

     0   :  { %v82_v0 = vlaneseq  ;;  %vm613_vm0 = vcmask 408576   ;;  %vm22_vm1 = vcmask 7168   ;;  %vm487_vm2 = vcmask 1041408   ;;  %s1203_s1 = inlined_call_operand.vmem [shape: f32[8,50], index: 1, kind: input, shape index: {}]   ;;  %s1204_s0 = inlined_call_operand.vmem [shape: f32[8,50,128], index: 0, kind: input, shape index: {}]   ;;  %s1205_s3 = inlined_call_operand.vmem [shape: f32[1,4], index: 3, kind: input, shape index: {}]   ;;  %s1206_s2 = inlined_call_operand.vmem [shape: f32[128,4], index: 2, kind: input, shape index: {}]   ;;  %s1207_s4 = inlined_call_operand.vmem [shape: f32[8,4], index: 4, kind: output, shape index: {}]  }
   0x1   :  { %v775_v4 = vld [vmem:[%s1203_s1] sm:$0xff]  ;;  %v39_v36 = vld [vmem:[%s1204_s0 + $0x78] sm:$0xff]  ;;  %v38_v37 = vld [vmem:[%s1204_s0 + $0x70] sm:$0xff]  ;;  %vm595_vm3 = vcmask 1041409   ;;  %vm597_vm4 = vcmask 1042434   ;;  %vm599_vm5 = vcmask 1043459  }
   0x2   :  { %v763_v1 = vshrl.u32 %v82_v0, 7  ;;  %v780_v5 = vperm.slane %v775_v4, 0  ;;  %v786_v6 = vperm.slane %v775_v4, 3  ;;  %v798_v9 = vperm.slane %v775_v4, 4  ;;  %v40_v34 = vld [vmem:[%s1204_s0 + $0x80] sm:$0xff]  ;;  %v25_v44 = vld [vmem:[%s1204_s0 + $0x8] sm:$0xff] }
   0x3   :  { %v804_v10 = vperm.slane %v775_v4, 5  ;;  %v124_v11 = vperm.slane %v775_v4, 1  ;;  %v167_v12 = vperm.slane %v775_v4, 2  ;;  %v829_v15 = vperm.slane %v775_v4, 7  ;;  %v24_v42 = vld [vmem:[%s1204_s0] sm:$0xff]  ;;  %v26_v47 = vld [vmem:[%s1204_s0 + $0x10] sm:$0xff] }
   0x4   :  { %693 = vset.pattern.permute.xlu0 %v763_v1  ;;  %v767_v2 = vadd.s32 32, %v763_v1  ;;  %v770_v3 = vadd.s32 16, %v763_v1  ;;  %v789_v7 = vadd.s32 40, %v763_v1  ;;  %v792_v8 = vadd.s32 48, %v763_v1  ;;  %v31_v53 = vld [vmem:[%s1204_s0 + $0x38] sm:$0xff]  ;;  %v32_v54 = vld [vmem:[%s1204_s0 + $0x40] sm:$0xff] }
   0x5   :  { %v813_v13 = vadd.s32 24, %v763_v1  ;;  %v822_v14 = vadd.s32 8, %v763_v1  ;;  %v614_v17 = vsel %vm613_vm0, %v775_v4, 0.0  ;;  %v860_v25 = vperm.slane %v775_v4, 6  ;;  %v33_v55 = vld [vmem:[%s1204_s0 + $0x48] sm:$0xff]  ;;  %v34_v59 = vld [vmem:[%s1204_s0 + $0x50] sm:$0xff] }
   0x6   :  { %695 = vset.pattern.permute.xlu2 %v767_v2  ;;  %694 = vset.pattern.permute.xlu1 %v770_v3  ;;  %vm601_vm6 = vcmask 1044484   ;;  %vm603_vm7 = vcmask 1045509   ;;  %vm605_vm8 = vcmask 1046534   ;;  %vm607_vm12 = vcmask 1047559  }
   0x7   :  { %vm685_vm14 = vcmask 31744  }
   0xc   :  { %86 = vperm.xlu0 %693, %v780_v5  }
   0xe   :  { %110 = vperm.xlu2 %695, %v780_v5   ;;  %98 = vperm.xlu1 %694, %v780_v5  }
  0x14   :  { %215 = vperm.xlu0 %693, %v786_v6  }
  0x16   :  { %696 = vset.pattern.permute.xlu2 %v789_v7  ;;  %698 = vset.pattern.permute.xlu1 %v792_v8 }
  0x1c   :  { %258 = vperm.xlu0 %693, %v798_v9  }
  0x1e   :  { %116 = vperm.xlu2 %696, %v780_v5   ;;  %122 = vperm.xlu1 %698, %v780_v5  }
  0x24   :  { %301 = vperm.xlu0 %693, %v804_v10  }
  0x26   :  { %697 = vset.pattern.permute.xlu2 %v763_v1  ;;  %699 = vset.pattern.permute.xlu1 %v770_v3 }
  0x2c   :  { %712 = vset.pattern.permute.xlu0 %v770_v3 }
  0x2e   :  { %129 = vperm.xlu2 %697, %v124_v11   ;;  %141 = vperm.xlu1 %699, %v124_v11  }
  0x34   :  { %184 = vperm.xlu0 %712, %v167_v12  }
  0x36   :  { %700 = vset.pattern.permute.xlu2 %v813_v13  ;;  %701 = vset.pattern.permute.xlu1 %v789_v7 }
  0x3c   :  { %270 = vperm.xlu0 %712, %v798_v9  }
  0x3e   :  { %147 = vperm.xlu2 %700, %v124_v11   ;;  %159 = vperm.xlu1 %701, %v124_v11  }
  0x44   :  { %313 = vperm.xlu0 %712, %v804_v10  }
  0x46   :  { %702 = vset.pattern.permute.xlu2 %v792_v8  ;;  %703 = vset.pattern.permute.xlu1 %v763_v1 }
  0x4c   :  { %715 = vset.pattern.permute.xlu0 %v822_v14 }
  0x4e   :  { %165 = vperm.xlu2 %702, %v124_v11   ;;  %172 = vperm.xlu1 %703, %v167_v12  }
  0x54   :  { %92 = vperm.xlu0 %715, %v780_v5  }
  0x56   :  { %704 = vset.pattern.permute.xlu2 %v822_v14  ;;  %706 = vset.pattern.permute.xlu1 %v789_v7 }
  0x5c   :  { %135 = vperm.xlu0 %715, %v124_v11  }
  0x5e   :  { %178 = vperm.xlu2 %704, %v167_v12   ;;  %202 = vperm.xlu1 %706, %v167_v12  }
  0x64   :  { %393 = vperm.xlu0 %715, %v829_v15  }
  0x66   :  { %705 = vset.pattern.permute.xlu2 %v767_v2  ;;  %708 = vset.pattern.permute.xlu1 %v813_v13 }
  0x68   :  { %v847_v20 = vpop.permute.xlu2 %110 }
  0x6c   :  { %720 = vset.pattern.permute.xlu0 %v813_v13 }
  0x6e   :  { %196 = vperm.xlu2 %705, %v167_v12  }
  0x74   :  { %319 = vperm.xlu0 %720, %v804_v10  }
  0x76   :  { %707 = vset.pattern.permute.xlu2 %v792_v8 }
  0x78   :  { %v851_v22 = vpop.permute.xlu2 %116 }
  0x7c   :  { %721 = vset.pattern.permute.xlu0 %v767_v2 }
  0x7e   :  { %208 = vperm.xlu2 %707, %v167_v12   ;;  %v87_v16 = vpop.permute.xlu0 %86 }
  0x7f   :  { %v425_v45 = vmul.f32 %v87_v16, %v24_v42 }
  0x80   :  { %v99_v21 = vpop.permute.xlu1 %98 }
  0x81   :  { %v427_v50 = vmul.f32 %v99_v21, %v26_v47 }
  0x84   :  { %153 = vperm.xlu0 %721, %v124_v11  }
  0x86   :  { %709 = vset.pattern.permute.xlu2 %v822_v14  ;;  %v840_v18 = vpop.permute.xlu0 %215 }
  0x88   :  { %615 = vadd.xlane.f32.xlu1 %v614_v17  ;;  %v130_v26 = vpop.permute.xlu2 %129 }
  0x89   :  { %v432_v57 = vmul.f32 %v130_v26, %v31_v53 }
  0x8c   :  { %325 = vperm.xlu0 %721, %v804_v10  }
  0x8e   :  { %221 = vperm.xlu2 %709, %v786_v6   ;;  %v844_v19 = vpop.permute.xlu0 %258 }
  0x90   :  { %v857_v24 = vpop.permute.xlu1 %122 }
  0x94   :  { %727 = vset.pattern.permute.xlu0 %v792_v8 }
  0x96   :  { %710 = vset.pattern.permute.xlu2 %v770_v3  ;;  %v854_v23 = vpop.permute.xlu0 %301 }
  0x98   :  { %v148_v29 = vpop.permute.xlu2 %147 }
  0x99   :  { %v435_v62 = vmul.f32 %v148_v29, %v34_v59  ;;  %v36_v29 = vld [vmem:[%s1204_s0 + $0x60] sm:$0xff] }
  0x9a   :  { %v60_v59 = vld [vmem:[%s1204_s0 + $0x120] sm:$0xff] }
  0x9c   :  { %294 = vperm.xlu0 %727, %v798_v9  }
  0x9e   :  { %227 = vperm.xlu2 %710, %v786_v6  }
  0xa0   :  { %v142_v28 = vpop.permute.xlu1 %141 }
  0xa1   :  { %104 = vperm.xlu1 %708, %v780_v5   ;;  %v434_v60 = vmul.f32 %v142_v28, %v33_v55 }
  0xa4   :  { %380 = vperm.xlu0 %727, %v860_v25  }
  0xa6   :  { %711 = vset.pattern.permute.xlu2 %v822_v14  ;;  %v185_v27 = vpop.permute.xlu0 %184 }
  0xa7   :  { %v441_v39 = vmul.f32 %v185_v27, %v40_v34  ;;  %v736_v27 = vmov 0.0  }
  0xa8   :  { %v868_v31 = vpop.permute.xlu2 %165  ;;  %23 = vst.msk [vmem:[#allocation3] sm:$0xff] %vm22_vm1, %v736_v27 }
  0xa9   :  { %190 = vperm.xlu1 %708, %v167_v12   ;;  %v45_v12 = vld [vmem:[%s1204_s0 + $0xa8] sm:$0xff] }
  0xaa   :  { %v446_v16 = vmul.f32 %v840_v18, %v45_v12  ;;  %v35_v18 = vld [vmem:[%s1204_s0 + $0x58] sm:$0xff]  ;;  %v30_v12 = vld [vmem:[%s1204_s0 + $0x30] sm:$0x3] }
  0xae   :  { %264 = vperm.xlu2 %711, %v798_v9   ;;  %v866_v30 = vpop.permute.xlu0 %270 }
  0xb0   :  { %v871_v32 = vpop.permute.xlu1 %159 }
  0xb1   :  { %233 = vperm.xlu1 %708, %v786_v6  }
  0xb6   :  { %307 = vperm.xlu2 %711, %v804_v10   ;;  %v874_v33 = vpop.permute.xlu0 %313 }
  0xb8   :  { %v179_v35 = vpop.permute.xlu2 %178 }
  0xb9   :  { %719 = vset.pattern.permute.xlu1 %v767_v2  ;;  %v440_v40 = vmul.f32 %v179_v35, %v39_v36 }
  0xbe   :  { %713 = vset.pattern.permute.xlu2 %v763_v1 }
  0xc0   :  { %v173_v38 = vpop.permute.xlu1 %172 }
  0xc1   :  { %v439_v41 = vmul.f32 %v173_v38, %v38_v37  ;;  %239 = vperm.xlu1 %719, %v786_v6   ;;  %v437_v38 = vmul.f32 %v871_v32, %v36_v29  ;;  %v52_v32 = vld [vmem:[%s1204_s0 + $0xe0] sm:$0xff]  ;;  %v41_v29 = vld [vmem:[%s1204_s0 + $0x88] sm:$0xff] }
  0xc3   :  { %v509_v43 = vadd.f32 %v440_v40, %v439_v41  ;;  %v612_v41 = vld [vmem:[#allocation3] sm:$0xff] }
  0xc5   :  { %v893_v46 = vadd.f32 %v509_v43, %v441_v39 }
  0xc6   :  { %344 = vperm.xlu2 %713, %v860_v25   ;;  %v93_v48 = vpop.permute.xlu0 %92 }
  0xc7   :  { %v426_v49 = vmul.f32 %v93_v48, %v25_v44 }
  0xc8   :  { %v917_v4 = vpop.permute.xlu2 %196 }
  0xc9   :  { %v482_v51 = vadd.f32 %v426_v49, %v425_v45  ;;  %282 = vperm.xlu1 %719, %v798_v9  }
  0xcb   :  { %v900_v52 = vadd.f32 %v482_v51, %v427_v50  ;;  %v54_v50 = vld [vmem:[%s1204_s0 + $0xf0] sm:$0xff]  ;;  %v453_v51 = vmul.f32 %v844_v19, %v52_v32 }
  0xce   :  { %714 = vset.pattern.permute.xlu2 %v822_v14  ;;  %v136_v56 = vpop.permute.xlu0 %135  ;;  %v46_v14 = vld [vmem:[%s1204_s0 + $0xb0] sm:$0xff] }
  0xcf   :  { %v433_v58 = vmul.f32 %v136_v56, %v32_v54  ;;  %v455_v54 = vmul.f32 %v866_v30, %v54_v50 }
  0xd0   :  { %v940_v28 = vpop.permute.xlu1 %202 }
  0xd1   :  { %v496_v61 = vadd.f32 %v433_v58, %v432_v57  ;;  %723 = vset.pattern.permute.xlu1 %v789_v7  ;;  %v59_v57 = vld [vmem:[%s1204_s0 + $0x118] sm:$0xff] }
  0xd2   :  { %v460_v19 = vmul.f32 %v854_v23, %v59_v57  ;;  %v67_v57 = vld [vmem:[%s1204_s0 + $0x158] sm:$0xff] }
  0xd3   :  { %v497_v63 = vadd.f32 %v496_v61, %v434_v60  ;;  %v27_v61 = vld [vmem:[%s1204_s0 + $0x18] sm:$0xff] }
  0xd5   :  { %v498_v0 = vadd.f32 %v497_v63, %v435_v62  ;;  %v28_v62 = vld [vmem:[%s1204_s0 + $0x20] sm:$0xff] }
  0xd6   :  { %350 = vperm.xlu2 %714, %v860_v25   ;;  %v924_v11 = vpop.permute.xlu0 %393 }
  0xd8   :  { %v921_v5 = vpop.permute.xlu2 %208 }
  0xd9   :  { %245 = vperm.xlu1 %723, %v786_v6  }
  0xde   :  { %716 = vset.pattern.permute.xlu2 %v763_v1 }
  0xe1   :  { %724 = vset.pattern.permute.xlu1 %v792_v8 }
  0xe6   :  { %387 = vperm.xlu2 %716, %v829_v15   ;;  %v935_v26 = vpop.permute.xlu0 %319 }
  0xe8   :  { %v222_v17 = vpop.permute.xlu2 %221 }
  0xe9   :  { %v447_v1 = vmul.f32 %v222_v17, %v46_v14  ;;  %251 = vperm.xlu1 %724, %v786_v6   ;;  %v37_v6 = vld [vmem:[%s1204_s0 + $0x68] sm:$0x3]  ;;  %v429_v17 = vmul.f32 %v847_v20, %v28_v62  ;;  %v42_v20 = vld [vmem:[%s1204_s0 + $0x90] sm:$0xff] }
  0xea   :  { %v438_v36 = vmul.f32 %v868_v31, %v37_v6  ;;  %v737_v31 = vmov 0  }
  0xeb   :  { %v522_v21 = vadd.f32 %v447_v1, %v446_v16  ;;  %732 = vset.pattern.permute.xlu0 %v737_v31  ;;  %v29_v16 = vld [vmem:[%s1204_s0 + $0x28] sm:$0xff] }
  0xec   :  { %v501_v45 = vsel %vm487_vm2, %v438_v36, 0.0  ;;  %v430_v27 = vmul.f32 %v851_v22, %v29_v16  ;;  %v44_v22 = vld [vmem:[%s1204_s0 + $0xa0] sm:$0x3]  ;;  %v43_v36 = vld [vmem:[%s1204_s0 + $0x98] sm:$0xff] }
  0xee   :  { %717 = vset.pattern.permute.xlu2 %v813_v13 }
  0xf1   :  { %726 = vset.pattern.permute.xlu1 %v767_v2  ;;  %v47_v2 = vld [vmem:[%s1204_s0 + $0xb8] sm:$0xff] }
  0xf6   :  { %276 = vperm.xlu2 %717, %v798_v9   ;;  %v154_v34 = vpop.permute.xlu0 %153 }
  0xf7   :  { %v436_v35 = vmul.f32 %v154_v34, %v35_v18 }
  0xf8   :  { %v228_v37 = vpop.permute.xlu2 %227 }
  0xf9   :  { %v499_v39 = vadd.f32 %v498_v0, %v436_v35  ;;  %v448_v40 = vmul.f32 %v228_v37, %v47_v2  ;;  %368 = vperm.xlu1 %726, %v860_v25   ;;  %v443_v37 = vmul.f32 %v917_v4, %v42_v20 }
  0xfb   :  { %v500_v42 = vadd.f32 %v499_v39, %v437_v38  ;;  %v958_v43 = vadd.f32 %v522_v21, %v448_v40  ;;  %v616_v44 = vpop.xlane.xlu1 %615  ;;  %v431_v21 = vmul.f32 %v857_v24, %v30_v12  ;;  %v445_v40 = vmul.f32 %v921_v5, %v44_v22 }
  0xfc   :  { %v617_v47 = vadd.f32 %v616_v44, %v612_v41  ;;  %v444_v41 = vmul.f32 %v940_v28, %v43_v36 }
  0xfd   :  { %v502_v48 = vadd.f32 %v501_v45, %v500_v42  ;;  %v488_v2 = vsel %vm487_vm2, %v431_v21, 0.0  ;;  %v514_v31 = vsel %vm487_vm2, %v445_v40, 0.0 }
  0xfe   :  { %718 = vset.pattern.permute.xlu2 %v770_v3  ;;  %619 = vst.msk [vmem:[#allocation3] sm:$0xff] %vm22_vm1, %v617_v47  ;;  %v53_v3 = vld [vmem:[%s1204_s0 + $0xe8] sm:$0xff] }
  0xff   :  { %v503_v23 = vrot.slane %v502_v48, 4 }
 0x101   :  { %411 = vperm.xlu1 %726, %v829_v15   ;;  %v504_v18 = vadd.f32 %v503_v23, %v502_v48 }
 0x103   :  { %v505_v24 = vrot.slane %v504_v18, 2 }
 0x105   :  { %v624_v49 = vld [vmem:[#allocation3] sm:$0xff]  ;;  %v506_v42 = vadd.f32 %v505_v24, %v504_v18 }
 0x106   :  { %356 = vperm.xlu2 %718, %v860_v25   ;;  %627 = vperm.xlu0 %732, %v624_v49  }
 0x107   :  { %v507_v32 = vrot.slane %v506_v42, 1 }
 0x108   :  { %v265_v53 = vpop.permute.xlu2 %264 }
 0x109   :  { %v454_v55 = vmul.f32 %v265_v53, %v53_v3  ;;  %729 = vset.pattern.permute.xlu1 %v789_v7 }
 0x10b   :  { %v535_v56 = vadd.f32 %v454_v55, %v453_v51 }
 0x10d   :  { %v980_v58 = vadd.f32 %v535_v56, %v455_v54  ;;  %v66_v56 = vld [vmem:[%s1204_s0 + $0x150] sm:$0xff] }
 0x10e   :  { %399 = vperm.xlu2 %718, %v829_v15  }
 0x110   :  { %v308_v60 = vpop.permute.xlu2 %307 }
 0x111   :  { %v461_v30 = vmul.f32 %v308_v60, %v60_v59  ;;  %374 = vperm.xlu1 %729, %v860_v25  }
 0x113   :  { %v994_v63 = vadd.f32 %v461_v30, %v460_v19  ;;  %v105_v0 = vpop.permute.xlu1 %104 }
 0x114   :  { %v428_v14 = vmul.f32 %v105_v0, %v27_v61 }
 0x116   :  { %v484_v1 = vadd.f32 %v900_v52, %v428_v14  ;;  %722 = vset.pattern.permute.xlu2 %v813_v13  ;;  %v48_v14 = vld [vmem:[%s1204_s0 + $0xc0] sm:$0xff] }
 0x118   :  { %v485_v6 = vadd.f32 %v484_v1, %v429_v17  ;;  %v49_v17 = vld [vmem:[%s1204_s0 + $0xc8] sm:$0xff] }
 0x119   :  { %731 = vset.pattern.permute.xlu1 %v792_v8 }
 0x11a   :  { %v486_v34 = vadd.f32 %v485_v6, %v430_v27  ;;  %v51_v27 = vld [vmem:[%s1204_s0 + $0xd8] sm:$0x3] }
 0x11b   :  { %v191_v13 = vpop.permute.xlu1 %190 }
 0x11c   :  { %v489_v52 = vadd.f32 %v488_v2, %v486_v34  ;;  %v442_v35 = vmul.f32 %v191_v13, %v41_v29 }
 0x11e   :  { %v490_v38 = vrot.slane %v489_v52, 4  ;;  %v511_v39 = vadd.f32 %v893_v46, %v442_v35  ;;  %362 = vperm.xlu2 %722, %v860_v25   ;;  %v508_v25 = vadd.f32 %v507_v32, %v506_v42  ;;  %v1064_v42 = vpop.permute.xlu0 %325 }
 0x120   :  { %v491_v44 = vadd.f32 %v490_v38, %v489_v52  ;;  %v512_v45 = vadd.f32 %v511_v39, %v443_v37  ;;  %v345_v3 = vpop.permute.xlu2 %344 }
 0x121   :  { %423 = vperm.xlu1 %731, %v829_v15   ;;  %v467_v60 = vmul.f32 %v345_v3, %v66_v56  ;;  %v659_v3 = vld [vmem:[%s1206_s2 + $0x70] sm:$0xff]  ;;  %v658_v56 = vld [vmem:[%s1206_s2 + $0x68] sm:$0xff] }
 0x122   :  { %v492_v47 = vrot.slane %v491_v44, 2  ;;  %v513_v48 = vadd.f32 %v512_v45, %v444_v41 }
 0x123   :  { %v234_v0 = vpop.permute.xlu1 %233 }
 0x124   :  { %v493_v4 = vadd.f32 %v492_v47, %v491_v44  ;;  %v515_v49 = vadd.f32 %v514_v31, %v513_v48  ;;  %v449_v1 = vmul.f32 %v234_v0, %v48_v14  ;;  %v56_v47 = vld [vmem:[%s1204_s0 + $0x100] sm:$0xff]  ;;  %v58_v48 = vld [vmem:[%s1204_s0 + $0x110] sm:$0x3] }
 0x126   :  { %v494_v50 = vrot.slane %v493_v4, 1  ;;  %v516_v46 = vrot.slane %v515_v49, 4  ;;  %405 = vperm.xlu2 %722, %v829_v15   ;;  %v524_v21 = vadd.f32 %v958_v43, %v449_v1  ;;  %v72_v1 = vld [vmem:[%s1204_s0 + $0x180] sm:$0x3] }
 0x128   :  { %v495_v5 = vadd.f32 %v494_v50, %v493_v4  ;;  %v517_v28 = vadd.f32 %v516_v46, %v515_v49  ;;  %v295_v49 = vpop.permute.xlu0 %294  ;;  %v68_v50 = vld [vmem:[%s1204_s0 + $0x160] sm:$0xff] }
 0x129   :  { %v459_v46 = vmul.f32 %v295_v49, %v58_v48  ;;  %v648_v49 = vld [vmem:[%s1206_s2 + $0x18] sm:$0xff] }
 0x12a   :  { %v518_v51 = vrot.slane %v517_v28, 2  ;;  %v596_v53 = vsel %vm595_vm3, %v508_v25, %v495_v5  ;;  %v57_v25 = vld [vmem:[%s1204_s0 + $0x108] sm:$0xff]  ;;  %v660_v5 = vld [vmem:[%s1206_s2 + $0x78] sm:$0xff] }
 0x12b   :  { %665 = vmatpush.msra.mxu0 %v660_v5  ;;  %v646_v5 = vld [vmem:[%s1206_s2 + $0x8] sm:$0xff] }
 0x12c   :  { %v519_v54 = vadd.f32 %v518_v51, %v517_v28  ;;  %v69_v28 = vld [vmem:[%s1204_s0 + $0x168] sm:$0xff] }
 0x12d   :  { %666 = vmatpush.msra.mxu0 %v659_v3  ;;  %v74_v3 = vld [vmem:[%s1204_s0 + $0x190] sm:$0xff] }
 0x12e   :  { %v520_v55 = vrot.slane %v519_v54, 1  ;;  %725 = vset.pattern.permute.xlu2 %v789_v7 }
 0x12f   :  { %667 = vmatpush.msra.mxu0 %v658_v56  ;;  %v75_v56 = vld [vmem:[%s1204_s0 + $0x198] sm:$0xff] }
 0x130   :  { %v521_v59 = vadd.f32 %v520_v55, %v519_v54  ;;  %v351_v19 = vpop.permute.xlu2 %350  ;;  %v540_v55 = vsel %vm487_vm2, %v459_v46, 0.0  ;;  %v65_v46 = vld [vmem:[%s1204_s0 + $0x148] sm:$0x3] }
 0x131   :  { %v468_v30 = vmul.f32 %v351_v19, %v67_v57  ;;  %v70_v19 = vld [vmem:[%s1204_s0 + $0x170] sm:$0xff] }
 0x132   :  { %v598_v61 = vsel %vm597_vm4, %v521_v59, %v596_v53 }
 0x133   :  { %v1036_v62 = vadd.f32 %v468_v30, %v467_v60  ;;  %v240_v12 = vpop.permute.xlu1 %239  ;;  %v657_v60 = vld [vmem:[%s1206_s2 + $0x60] sm:$0xff] }
 0x134   :  { %668 = vmatpush.msra.mxu0 %v657_v60 }
 0x136   :  { %288 = vperm.xlu2 %725, %v798_v9   ;;  %v50_v9 = vld [vmem:[%s1204_s0 + $0xd0] sm:$0xff] }
 0x13b   :  { %v283_v23 = vpop.permute.xlu1 %282 }
 0x13c   :  { %v457_v32 = vmul.f32 %v283_v23, %v56_v47  ;;  %v656_v23 = vld [vmem:[%s1206_s2 + $0x58] sm:$0xff] }
 0x13d   :  { %669 = vmatpush.msra.mxu0 %v656_v23 }
 0x13e   :  { %331 = vperm.xlu2 %725, %v804_v10  }
 0x140   :  { %v1056_v29 = vpop.permute.xlu2 %387 }
 0x146   :  { %728 = vset.pattern.permute.xlu2 %v792_v8  ;;  %v450_v8 = vmul.f32 %v240_v12, %v49_v17  ;;  %v71_v12 = vld [vmem:[%s1204_s0 + $0x178] sm:$0xff]  ;;  %v381_v17 = vpop.permute.xlu0 %380 }
 0x148   :  { %v525_v18 = vadd.f32 %v524_v21, %v450_v8  ;;  %v61_v8 = vld [vmem:[%s1204_s0 + $0x128] sm:$0xff] }
 0x14b   :  { %v246_v16 = vpop.permute.xlu1 %245 }
 0x14e   :  { %337 = vperm.xlu2 %728, %v804_v10   ;;  %v451_v10 = vmul.f32 %v246_v16, %v50_v9 }
 0x150   :  { %v526_v2 = vadd.f32 %v525_v18, %v451_v10  ;;  %v277_v24 = vpop.permute.xlu2 %276  ;;  %v654_v18 = vld [vmem:[%s1206_s2 + $0x48] sm:$0xff] }
 0x156   :  { %730 = vset.pattern.permute.xlu2 %v789_v7 }
 0x15b   :  { %v252_v6 = vpop.permute.xlu1 %251 }
 0x15c   :  { %v452_v34 = vmul.f32 %v252_v6, %v51_v27  ;;  %v473_v27 = vmul.f32 %v381_v17, %v72_v1 }
 0x15e   :  { %v527_v20 = vsel %vm487_vm2, %v452_v34, 0.0  ;;  %417 = vperm.xlu2 %730, %v829_v15   ;;  %v55_v15 = vld [vmem:[%s1204_s0 + $0xf8] sm:$0xff] }
 0x15f   :  { %v528_v13 = vadd.f32 %v527_v20, %v526_v2  ;;  %v456_v45 = vmul.f32 %v277_v24, %v55_v15  ;;  %v462_v2 = vmul.f32 %v874_v33, %v61_v8  ;;  %v653_v20 = vld [vmem:[%s1206_s2 + $0x40] sm:$0xff]  ;;  %v566_v24 = vsel %vm487_vm2, %v473_v27, 0.0 }
 0x160   :  { %v357_v37 = vpop.permute.xlu2 %356 }
 0x161   :  { %v529_v7 = vrot.slane %v528_v13, 4  ;;  %v537_v4 = vadd.f32 %v980_v58, %v456_v45  ;;  %v469_v51 = vmul.f32 %v357_v37, %v68_v50  ;;  %v651_v37 = vld [vmem:[%s1206_s2 + $0x30] sm:$0xff]  ;;  %v650_v45 = vld [vmem:[%s1206_s2 + $0x28] sm:$0xff] }
 0x163   :  { %v530_v22 = vadd.f32 %v529_v7, %v528_v13  ;;  %v538_v54 = vadd.f32 %v537_v4, %v457_v32  ;;  %v562_v30 = vadd.f32 %v1036_v62, %v469_v51  ;;  %v655_v62 = vld [vmem:[%s1206_s2 + $0x50] sm:$0xff]  ;;  %v649_v32 = vld [vmem:[%s1206_s2 + $0x20] sm:$0xff]  ;;  %v73_v51 = vld [vmem:[%s1204_s0 + $0x188] sm:$0xff] }
 0x164   :  { %670 = vmatpush.msra.mxu0 %v655_v62  ;;  %v62_v13 = vld [vmem:[%s1204_s0 + $0x130] sm:$0xff]  ;;  %v474_v60 = vmul.f32 %v1056_v29, %v73_v51  ;;  %v79_v62 = vld [vmem:[%s1204_s0 + $0x1b8] sm:$0x3] }
 0x165   :  { %v531_v43 = vrot.slane %v530_v22, 2  ;;  %v463_v33 = vmul.f32 %v935_v26, %v62_v13  ;;  %v64_v26 = vld [vmem:[%s1204_s0 + $0x140] sm:$0xff] }
 0x166   :  { %671 = vmatpush.msra.mxu0 %v654_v18 }
 0x167   :  { %v532_v52 = vadd.f32 %v531_v43, %v530_v22  ;;  %v652_v43 = vld [vmem:[%s1206_s2 + $0x38] sm:$0xff] }
 0x168   :  { %v1062_v39 = vpop.permute.xlu2 %399  ;;  %672 = vmatpush.msra.mxu0 %v653_v20 }
 0x169   :  { %v533_v35 = vrot.slane %v532_v52, 1 }
 0x16a   :  { %673 = vmatpush.msra.mxu0 %v652_v43 }
 0x16b   :  { %v534_v36 = vadd.f32 %v533_v35, %v532_v52  ;;  %v369_v41 = vpop.permute.xlu1 %368  ;;  %v549_v35 = vadd.f32 %v994_v63, %v462_v2 }
 0x16c   :  { %v471_v14 = vmul.f32 %v369_v41, %v70_v19  ;;  %674 = vmatpush.msra.mxu0 %v651_v37  ;;  %v475_v19 = vmul.f32 %v924_v11, %v74_v3  ;;  %v77_v11 = vld [vmem:[%s1204_s0 + $0x1a8] sm:$0xff] }
 0x16d   :  { %v1060_v38 = vsel %vm599_vm5, %v534_v36, %v598_v61  ;;  %v550_v48 = vadd.f32 %v549_v35, %v463_v33 }
 0x16e   :  { %675 = vmatpush.msra.mxu0 %v650_v45 }
 0x170   :  { %676 = vmatpush.msra.mxu0 %v649_v32 }
 0x172   :  { %677 = vmatpush.msra.mxu0 %v648_v49 }
 0x173   :  { %v1077_v31 = vpop.permute.xlu1 %411 }
 0x178   :  { %v363_v40 = vpop.permute.xlu2 %362 }
 0x179   :  { %v470_v57 = vmul.f32 %v363_v40, %v69_v28  ;;  %v63_v40 = vld [vmem:[%s1204_s0 + $0x138] sm:$0xff] }
 0x17a   :  { %v464_v47 = vmul.f32 %v1064_v42, %v63_v40 }
 0x17b   :  { %v563_v16 = vadd.f32 %v562_v30, %v470_v57  ;;  %v628_v57 = vpop.permute.xlu0 %627 }
 0x17c   :  { %v551_v42 = vadd.f32 %v550_v48, %v464_v47  ;;  %734 = vrcp.f32 %v628_v57  ;;  %vm635_vm9 = vweird.f32 %v628_v57 }
 0x17d   :  { %v564_v6 = vadd.f32 %v563_v16, %v471_v14  ;;  %v574_v14 = vadd.f32 %v475_v19, %v474_v60 }
 0x180   :  { %v1069_v44 = vpop.permute.xlu2 %405 }
 0x183   :  { %v375_v0 = vpop.permute.xlu1 %374 }
 0x184   :  { %v472_v21 = vmul.f32 %v375_v0, %v71_v12  ;;  %v476_v12 = vmul.f32 %v1062_v39, %v75_v56  ;;  %v478_v39 = vmul.f32 %v1077_v31, %v77_v11 }
 0x186   :  { %v565_v7 = vadd.f32 %v564_v6, %v472_v21  ;;  %v575_v1 = vadd.f32 %v574_v14, %v476_v12  ;;  %v735_v21 = vpop.eup %734 }
 0x187   :  { %vm636_vm10 = vweird.f32 %v735_v21 }
 0x188   :  { %v567_v41 = vadd.f32 %v566_v24, %v565_v7  ;;  %vm637_vm11 = vmor %vm635_vm9, %vm636_vm10 }
 0x18a   :  { %v568_v4 = vrot.slane %v567_v41, 4 }
 0x18c   :  { %v569_v28 = vadd.f32 %v568_v4, %v567_v41  ;;  %v641_v41 = vand.u32 2147483648, %v628_v57 }
 0x18e   :  { %v570_v30 = vrot.slane %v569_v28, 2  ;;  %v642_v48 = vor.u32 1.1754944e-38, %v641_v41 }
 0x190   :  { %v289_v58 = vpop.permute.xlu2 %288  ;;  %v571_v17 = vadd.f32 %v570_v30, %v569_v28 }
 0x191   :  { %v458_v53 = vmul.f32 %v289_v58, %v57_v25 }
 0x192   :  { %v572_v27 = vrot.slane %v571_v17, 1 }
 0x193   :  { %v539_v59 = vadd.f32 %v538_v54, %v458_v53  ;;  %v645_v54 = vld [vmem:[%s1206_s2] sm:$0xff] }
 0x195   :  { %v541_v61 = vadd.f32 %v540_v55, %v539_v59 }
 0x197   :  { %v542_v9 = vrot.slane %v541_v61, 4 }
 0x198   :  { %v332_v36 = vpop.permute.xlu2 %331 }
 0x199   :  { %v543_v10 = vadd.f32 %v542_v9, %v541_v61  ;;  %v465_v50 = vmul.f32 %v332_v36, %v64_v26  ;;  %v76_v61 = vld [vmem:[%s1204_s0 + $0x1a0] sm:$0xff]  ;;  %v424_v9 = vpop.permute.xlu1 %423  ;;  %v639_v26 = vand.u32 2147483647, %v628_v57 }
 0x19a   :  { %v477_v16 = vmul.f32 %v1069_v44, %v76_v61  ;;  %v78_v44 = vld [vmem:[%s1204_s0 + $0x1b0] sm:$0xff]  ;;  %v480_v6 = vmul.f32 %v424_v9, %v79_v62 }
 0x19b   :  { %v544_v34 = vrot.slane %v543_v10, 2  ;;  %v552_v53 = vadd.f32 %v551_v42, %v465_v50  ;;  %vm640_vm13 = vcmp.eq.f32.partialorder %v639_v26, 8.507059e+37 }
 0x19c   :  { %v579_v24 = vsel %vm487_vm2, %v480_v6, 0.0 }
 0x19d   :  { %v545_v22 = vadd.f32 %v544_v34, %v543_v10  ;;  %v576_v10 = vadd.f32 %v575_v1, %v477_v16  ;;  %v631_v34 = vmul.f32 %v735_v21, %v628_v57 }
 0x19f   :  { %v546_v52 = vrot.slane %v545_v22, 1  ;;  %v577_v7 = vadd.f32 %v576_v10, %v478_v39  ;;  %v632_v33 = vsub.f32 1.0, %v631_v34 }
 0x1a1   :  { %v547_v15 = vadd.f32 %v546_v52, %v545_v22  ;;  %v573_v22 = vadd.f32 %v572_v27, %v571_v17  ;;  %v633_v37 = vmul.f32 %v735_v21, %v632_v33 }
 0x1a3   :  { %v602_v63 = vsel %vm601_vm6, %v547_v15, %v1060_v38  ;;  %v647_v38 = vld [vmem:[%s1206_s2 + $0x10] sm:$0xff]  ;;  %v634_v45 = vadd.f32 %v735_v21, %v633_v37 }
 0x1a4   :  { %678 = vmatpush.msra.mxu0 %v647_v38  ;;  %v733_v38 = vld [vmem:[%s1205_s3] ss:$0 sm:$0xff] }
 0x1a5   :  { %v638_v4 = vsel %vm637_vm11, %v735_v21, %v634_v45 }
 0x1a6   :  { %679 = vmatpush.msra.mxu0 %v646_v5  ;;  %v643_v50 = vsel %vm640_vm13, %v642_v48, %v638_v4 }
 0x1a8   :  { %v338_v25 = vpop.permute.xlu2 %337  ;;  %680 = vmatpush.msra.mxu0 %v645_v54 }
 0x1a9   :  { %v466_v58 = vmul.f32 %v338_v25, %v65_v46 }
 0x1ab   :  { %v553_v55 = vsel %vm487_vm2, %v466_v58, 0.0 }
 0x1ac   :  { %v554_v59 = vadd.f32 %v553_v55, %v552_v53 }
 0x1ae   :  { %v555_v0 = vrot.slane %v554_v59, 4 }
 0x1b0   :  { %v556_v23 = vadd.f32 %v555_v0, %v554_v59 }
 0x1b2   :  { %v557_v29 = vrot.slane %v556_v23, 2 }
 0x1b4   :  { %v558_v8 = vadd.f32 %v557_v29, %v556_v23 }
 0x1b6   :  { %v559_v18 = vrot.slane %v558_v8, 1 }
 0x1b8   :  { %v560_v2 = vadd.f32 %v559_v18, %v558_v8  ;;  %v418_v20 = vpop.permute.xlu2 %417 }
 0x1b9   :  { %v479_v13 = vmul.f32 %v418_v20, %v78_v44 }
 0x1ba   :  { %v604_v43 = vsel %vm603_vm7, %v560_v2, %v602_v63 }
 0x1bb   :  { %v578_v31 = vadd.f32 %v577_v7, %v479_v13  ;;  %v606_v52 = vsel %vm605_vm8, %v573_v22, %v604_v43 }
 0x1bd   :  { %v580_v35 = vadd.f32 %v579_v24, %v578_v31 }
 0x1bf   :  { %v581_v36 = vrot.slane %v580_v35, 4 }
 0x1c1   :  { %v582_v40 = vadd.f32 %v581_v36, %v580_v35 }
 0x1c3   :  { %v583_v15 = vrot.slane %v582_v40, 2 }
 0x1c5   :  { %v584_v47 = vadd.f32 %v583_v15, %v582_v40 }
 0x1c7   :  { %v585_v32 = vrot.slane %v584_v47, 1 }
 0x1c9   :  { %v586_v63 = vadd.f32 %v585_v32, %v584_v47 }
 0x1cb   :  { %v608_v49 = vsel %vm607_vm12, %v586_v63, %v606_v52 }
 0x1cc   :  { %v644_v46 = vmul.f32 %v643_v50, %v608_v49 }
 0x1ce   :  { %681 = vmatmul.f32.vlgmr.msra.gmra.mxu0 %v644_v46 }
 0x24b   :  { %v682_v42 = vpop.f32.mrf.mxu0 }
 0x24c   :  { %v683_v25 = vadd.f32 %v733_v38, %v682_v42 }
 0x24e   :  { %686 = vst.msk [vmem:[%s1207_s4] sm:$0xff] %vm685_vm14, %v683_v25 }

// kernel: tpu_custom_call.1
= control target key start
LH: loop header
LB: loop body
LE: loop exit
PB: predicated region body
PF: predicated region fallthrough
CT: control target
= control target key end

     0   :  { %v82_v0 = vlaneseq  ;;  %vm613_vm0 = vcmask 408576   ;;  %vm22_vm1 = vcmask 7168   ;;  %vm487_vm2 = vcmask 1041408   ;;  %s1203_s1 = inlined_call_operand.vmem [shape: f32[8,50], index: 1, kind: input, shape index: {}]   ;;  %s1204_s0 = inlined_call_operand.vmem [shape: f32[8,50,128], index: 0, kind: input, shape index: {}]   ;;  %s1205_s3 = inlined_call_operand.vmem [shape: f32[1,4], index: 3, kind: input, shape index: {}]   ;;  %s1206_s2 = inlined_call_operand.vmem [shape: f32[128,4], index: 2, kind: input, shape index: {}]   ;;  %s1207_s4 = inlined_call_operand.vmem [shape: f32[8,4], index: 4, kind: output, shape index: {}]  }
   0x1   :  { %v775_v4 = vld [vmem:[%s1203_s1] sm:$0xff]  ;;  %v39_v36 = vld [vmem:[%s1204_s0 + $0x78] sm:$0xff]  ;;  %v38_v37 = vld [vmem:[%s1204_s0 + $0x70] sm:$0xff]  ;;  %vm595_vm3 = vcmask 1041409   ;;  %vm597_vm4 = vcmask 1042434   ;;  %vm599_vm5 = vcmask 1043459  }
   0x2   :  { %v763_v1 = vshrl.u32 %v82_v0, 7  ;;  %v780_v5 = vperm.slane %v775_v4, 0  ;;  %v786_v6 = vperm.slane %v775_v4, 3  ;;  %v798_v9 = vperm.slane %v775_v4, 4  ;;  %v40_v34 = vld [vmem:[%s1204_s0 + $0x80] sm:$0xff]  ;;  %v25_v44 = vld [vmem:[%s1204_s0 + $0x8] sm:$0xff] }
   0x3   :  { %v804_v10 = vperm.slane %v775_v4, 5  ;;  %v124_v11 = vperm.slane %v775_v4, 1  ;;  %v167_v12 = vperm.slane %v775_v4, 2  ;;  %v829_v15 = vperm.slane %v775_v4, 7  ;;  %v24_v42 = vld [vmem:[%s1204_s0] sm:$0xff]  ;;  %v26_v47 = vld [vmem:[%s1204_s0 + $0x10] sm:$0xff] }
   0x4   :  { %693 = vset.pattern.permute.xlu0 %v763_v1  ;;  %v767_v2 = vadd.s32 32, %v763_v1  ;;  %v770_v3 = vadd.s32 16, %v763_v1  ;;  %v789_v7 = vadd.s32 40, %v763_v1  ;;  %v792_v8 = vadd.s32 48, %v763_v1  ;;  %v31_v53 = vld [vmem:[%s1204_s0 + $0x38] sm:$0xff]  ;;  %v32_v54 = vld [vmem:[%s1204_s0 + $0x40] sm:$0xff] }
   0x5   :  { %v813_v13 = vadd.s32 24, %v763_v1  ;;  %v822_v14 = vadd.s32 8, %v763_v1  ;;  %v614_v17 = vsel %vm613_vm0, %v775_v4, 0.0  ;;  %v860_v25 = vperm.slane %v775_v4, 6  ;;  %v33_v55 = vld [vmem:[%s1204_s0 + $0x48] sm:$0xff]  ;;  %v34_v59 = vld [vmem:[%s1204_s0 + $0x50] sm:$0xff] }
   0x6   :  { %695 = vset.pattern.permute.xlu2 %v767_v2  ;;  %694 = vset.pattern.permute.xlu1 %v770_v3  ;;  %vm601_vm6 = vcmask 1044484   ;;  %vm603_vm7 = vcmask 1045509   ;;  %vm605_vm8 = vcmask 1046534   ;;  %vm607_vm12 = vcmask 1047559  }
   0x7   :  { %vm685_vm14 = vcmask 31744  }
   0xc   :  { %86 = vperm.xlu0 %693, %v780_v5  }
   0xe   :  { %110 = vperm.xlu2 %695, %v780_v5   ;;  %98 = vperm.xlu1 %694, %v780_v5  }
  0x14   :  { %215 = vperm.xlu0 %693, %v786_v6  }
  0x16   :  { %696 = vset.pattern.permute.xlu2 %v789_v7  ;;  %698 = vset.pattern.permute.xlu1 %v792_v8 }
  0x1c   :  { %258 = vperm.xlu0 %693, %v798_v9  }
  0x1e   :  { %116 = vperm.xlu2 %696, %v780_v5   ;;  %122 = vperm.xlu1 %698, %v780_v5  }
  0x24   :  { %301 = vperm.xlu0 %693, %v804_v10  }
  0x26   :  { %697 = vset.pattern.permute.xlu2 %v763_v1  ;;  %699 = vset.pattern.permute.xlu1 %v770_v3 }
  0x2c   :  { %712 = vset.pattern.permute.xlu0 %v770_v3 }
  0x2e   :  { %129 = vperm.xlu2 %697, %v124_v11   ;;  %141 = vperm.xlu1 %699, %v124_v11  }
  0x34   :  { %184 = vperm.xlu0 %712, %v167_v12  }
  0x36   :  { %700 = vset.pattern.permute.xlu2 %v813_v13  ;;  %701 = vset.pattern.permute.xlu1 %v789_v7 }
  0x3c   :  { %270 = vperm.xlu0 %712, %v798_v9  }
  0x3e   :  { %147 = vperm.xlu2 %700, %v124_v11   ;;  %159 = vperm.xlu1 %701, %v124_v11  }
  0x44   :  { %313 = vperm.xlu0 %712, %v804_v10  }
  0x46   :  { %702 = vset.pattern.permute.xlu2 %v792_v8  ;;  %703 = vset.pattern.permute.xlu1 %v763_v1 }
  0x4c   :  { %715 = vset.pattern.permute.xlu0 %v822_v14 }
  0x4e   :  { %165 = vperm.xlu2 %702, %v124_v11   ;;  %172 = vperm.xlu1 %703, %v167_v12  }
  0x54   :  { %92 = vperm.xlu0 %715, %v780_v5  }
  0x56   :  { %704 = vset.pattern.permute.xlu2 %v822_v14  ;;  %706 = vset.pattern.permute.xlu1 %v789_v7 }
  0x5c   :  { %135 = vperm.xlu0 %715, %v124_v11  }
  0x5e   :  { %178 = vperm.xlu2 %704, %v167_v12   ;;  %202 = vperm.xlu1 %706, %v167_v12  }
  0x64   :  { %393 = vperm.xlu0 %715, %v829_v15  }
  0x66   :  { %705 = vset.pattern.permute.xlu2 %v767_v2  ;;  %708 = vset.pattern.permute.xlu1 %v813_v13 }
  0x68   :  { %v847_v20 = vpop.permute.xlu2 %110 }
  0x6c   :  { %720 = vset.pattern.permute.xlu0 %v813_v13 }
  0x6e   :  { %196 = vperm.xlu2 %705, %v167_v12  }
  0x74   :  { %319 = vperm.xlu0 %720, %v804_v10  }
  0x76   :  { %707 = vset.pattern.permute.xlu2 %v792_v8 }
  0x78   :  { %v851_v22 = vpop.permute.xlu2 %116 }
  0x7c   :  { %721 = vset.pattern.permute.xlu0 %v767_v2 }
  0x7e   :  { %208 = vperm.xlu2 %707, %v167_v12   ;;  %v87_v16 = vpop.permute.xlu0 %86 }
  0x7f   :  { %v425_v45 = vmul.f32 %v87_v16, %v24_v42 }
  0x80   :  { %v99_v21 = vpop.permute.xlu1 %98 }
  0x81   :  { %v427_v50 = vmul.f32 %v99_v21, %v26_v47 }
  0x84   :  { %153 = vperm.xlu0 %721, %v124_v11  }
  0x86   :  { %709 = vset.pattern.permute.xlu2 %v822_v14  ;;  %v840_v18 = vpop.permute.xlu0 %215 }
  0x88   :  { %615 = vadd.xlane.f32.xlu1 %v614_v17  ;;  %v130_v26 = vpop.permute.xlu2 %129 }
  0x89   :  { %v432_v57 = vmul.f32 %v130_v26, %v31_v53 }
  0x8c   :  { %325 = vperm.xlu0 %721, %v804_v10  }
  0x8e   :  { %221 = vperm.xlu2 %709, %v786_v6   ;;  %v844_v19 = vpop.permute.xlu0 %258 }
  0x90   :  { %v857_v24 = vpop.permute.xlu1 %122 }
  0x94   :  { %727 = vset.pattern.permute.xlu0 %v792_v8 }
  0x96   :  { %710 = vset.pattern.permute.xlu2 %v770_v3  ;;  %v854_v23 = vpop.permute.xlu0 %301 }
  0x98   :  { %v148_v29 = vpop.permute.xlu2 %147 }
  0x99   :  { %v435_v62 = vmul.f32 %v148_v29, %v34_v59  ;;  %v36_v29 = vld [vmem:[%s1204_s0 + $0x60] sm:$0xff] }
  0x9a   :  { %v60_v59 = vld [vmem:[%s1204_s0 + $0x120] sm:$0xff] }
  0x9c   :  { %294 = vperm.xlu0 %727, %v798_v9  }
  0x9e   :  { %227 = vperm.xlu2 %710, %v786_v6  }
  0xa0   :  { %v142_v28 = vpop.permute.xlu1 %141 }
  0xa1   :  { %104 = vperm.xlu1 %708, %v780_v5   ;;  %v434_v60 = vmul.f32 %v142_v28, %v33_v55 }
  0xa4   :  { %380 = vperm.xlu0 %727, %v860_v25  }
  0xa6   :  { %711 = vset.pattern.permute.xlu2 %v822_v14  ;;  %v185_v27 = vpop.permute.xlu0 %184 }
  0xa7   :  { %v441_v39 = vmul.f32 %v185_v27, %v40_v34  ;;  %v736_v27 = vmov 0.0  }
  0xa8   :  { %v868_v31 = vpop.permute.xlu2 %165  ;;  %23 = vst.msk [vmem:[#allocation3] sm:$0xff] %vm22_vm1, %v736_v27 }
  0xa9   :  { %190 = vperm.xlu1 %708, %v167_v12   ;;  %v45_v12 = vld [vmem:[%s1204_s0 + $0xa8] sm:$0xff] }
  0xaa   :  { %v446_v16 = vmul.f32 %v840_v18, %v45_v12  ;;  %v35_v18 = vld [vmem:[%s1204_s0 + $0x58] sm:$0xff]  ;;  %v30_v12 = vld [vmem:[%s1204_s0 + $0x30] sm:$0x3] }
  0xae   :  { %264 = vperm.xlu2 %711, %v798_v9   ;;  %v866_v30 = vpop.permute.xlu0 %270 }
  0xb0   :  { %v871_v32 = vpop.permute.xlu1 %159 }
  0xb1   :  { %233 = vperm.xlu1 %708, %v786_v6  }
  0xb6   :  { %307 = vperm.xlu2 %711, %v804_v10   ;;  %v874_v33 = vpop.permute.xlu0 %313 }
  0xb8   :  { %v179_v35 = vpop.permute.xlu2 %178 }
  0xb9   :  { %719 = vset.pattern.permute.xlu1 %v767_v2  ;;  %v440_v40 = vmul.f32 %v179_v35, %v39_v36 }
  0xbe   :  { %713 = vset.pattern.permute.xlu2 %v763_v1 }
  0xc0   :  { %v173_v38 = vpop.permute.xlu1 %172 }
  0xc1   :  { %v439_v41 = vmul.f32 %v173_v38, %v38_v37  ;;  %239 = vperm.xlu1 %719, %v786_v6   ;;  %v437_v38 = vmul.f32 %v871_v32, %v36_v29  ;;  %v52_v32 = vld [vmem:[%s1204_s0 + $0xe0] sm:$0xff]  ;;  %v41_v29 = vld [vmem:[%s1204_s0 + $0x88] sm:$0xff] }
  0xc3   :  { %v509_v43 = vadd.f32 %v440_v40, %v439_v41  ;;  %v612_v41 = vld [vmem:[#allocation3] sm:$0xff] }
  0xc5   :  { %v893_v46 = vadd.f32 %v509_v43, %v441_v39 }
  0xc6   :  { %344 = vperm.xlu2 %713, %v860_v25   ;;  %v93_v48 = vpop.permute.xlu0 %92 }
  0xc7   :  { %v426_v49 = vmul.f32 %v93_v48, %v25_v44 }
  0xc8   :  { %v917_v4 = vpop.permute.xlu2 %196 }
  0xc9   :  { %v482_v51 = vadd.f32 %v426_v49, %v425_v45  ;;  %282 = vperm.xlu1 %719, %v798_v9  }
  0xcb   :  { %v900_v52 = vadd.f32 %v482_v51, %v427_v50  ;;  %v54_v50 = vld [vmem:[%s1204_s0 + $0xf0] sm:$0xff]  ;;  %v453_v51 = vmul.f32 %v844_v19, %v52_v32 }
  0xce   :  { %714 = vset.pattern.permute.xlu2 %v822_v14  ;;  %v136_v56 = vpop.permute.xlu0 %135  ;;  %v46_v14 = vld [vmem:[%s1204_s0 + $0xb0] sm:$0xff] }
  0xcf   :  { %v433_v58 = vmul.f32 %v136_v56, %v32_v54  ;;  %v455_v54 = vmul.f32 %v866_v30, %v54_v50 }
  0xd0   :  { %v940_v28 = vpop.permute.xlu1 %202 }
  0xd1   :  { %v496_v61 = vadd.f32 %v433_v58, %v432_v57  ;;  %723 = vset.pattern.permute.xlu1 %v789_v7  ;;  %v59_v57 = vld [vmem:[%s1204_s0 + $0x118] sm:$0xff] }
  0xd2   :  { %v460_v19 = vmul.f32 %v854_v23, %v59_v57  ;;  %v67_v57 = vld [vmem:[%s1204_s0 + $0x158] sm:$0xff] }
  0xd3   :  { %v497_v63 = vadd.f32 %v496_v61, %v434_v60  ;;  %v27_v61 = vld [vmem:[%s1204_s0 + $0x18] sm:$0xff] }
  0xd5   :  { %v498_v0 = vadd.f32 %v497_v63, %v435_v62  ;;  %v28_v62 = vld [vmem:[%s1204_s0 + $0x20] sm:$0xff] }
  0xd6   :  { %350 = vperm.xlu2 %714, %v860_v25   ;;  %v924_v11 = vpop.permute.xlu0 %393 }
  0xd8   :  { %v921_v5 = vpop.permute.xlu2 %208 }
  0xd9   :  { %245 = vperm.xlu1 %723, %v786_v6  }
  0xde   :  { %716 = vset.pattern.permute.xlu2 %v763_v1 }
  0xe1   :  { %724 = vset.pattern.permute.xlu1 %v792_v8 }
  0xe6   :  { %387 = vperm.xlu2 %716, %v829_v15   ;;  %v935_v26 = vpop.permute.xlu0 %319 }
  0xe8   :  { %v222_v17 = vpop.permute.xlu2 %221 }
  0xe9   :  { %v447_v1 = vmul.f32 %v222_v17, %v46_v14  ;;  %251 = vperm.xlu1 %724, %v786_v6   ;;  %v37_v6 = vld [vmem:[%s1204_s0 + $0x68] sm:$0x3]  ;;  %v429_v17 = vmul.f32 %v847_v20, %v28_v62  ;;  %v42_v20 = vld [vmem:[%s1204_s0 + $0x90] sm:$0xff] }
  0xea   :  { %v438_v36 = vmul.f32 %v868_v31, %v37_v6  ;;  %v737_v31 = vmov 0  }
  0xeb   :  { %v522_v21 = vadd.f32 %v447_v1, %v446_v16  ;;  %732 = vset.pattern.permute.xlu0 %v737_v31  ;;  %v29_v16 = vld [vmem:[%s1204_s0 + $0x28] sm:$0xff] }
  0xec   :  { %v501_v45 = vsel %vm487_vm2, %v438_v36, 0.0  ;;  %v430_v27 = vmul.f32 %v851_v22, %v29_v16  ;;  %v44_v22 = vld [vmem:[%s1204_s0 + $0xa0] sm:$0x3]  ;;  %v43_v36 = vld [vmem:[%s1204_s0 + $0x98] sm:$0xff] }
  0xee   :  { %717 = vset.pattern.permute.xlu2 %v813_v13 }
  0xf1   :  { %726 = vset.pattern.permute.xlu1 %v767_v2  ;;  %v47_v2 = vld [vmem:[%s1204_s0 + $0xb8] sm:$0xff] }
  0xf6   :  { %276 = vperm.xlu2 %717, %v798_v9   ;;  %v154_v34 = vpop.permute.xlu0 %153 }
  0xf7   :  { %v436_v35 = vmul.f32 %v154_v34, %v35_v18 }
  0xf8   :  { %v228_v37 = vpop.permute.xlu2 %227 }
  0xf9   :  { %v499_v39 = vadd.f32 %v498_v0, %v436_v35  ;;  %v448_v40 = vmul.f32 %v228_v37, %v47_v2  ;;  %368 = vperm.xlu1 %726, %v860_v25   ;;  %v443_v37 = vmul.f32 %v917_v4, %v42_v20 }
  0xfb   :  { %v500_v42 = vadd.f32 %v499_v39, %v437_v38  ;;  %v958_v43 = vadd.f32 %v522_v21, %v448_v40  ;;  %v616_v44 = vpop.xlane.xlu1 %615  ;;  %v431_v21 = vmul.f32 %v857_v24, %v30_v12  ;;  %v445_v40 = vmul.f32 %v921_v5, %v44_v22 }
  0xfc   :  { %v617_v47 = vadd.f32 %v616_v44, %v612_v41  ;;  %v444_v41 = vmul.f32 %v940_v28, %v43_v36 }
  0xfd   :  { %v502_v48 = vadd.f32 %v501_v45, %v500_v42  ;;  %v488_v2 = vsel %vm487_vm2, %v431_v21, 0.0  ;;  %v514_v31 = vsel %vm487_vm2, %v445_v40, 0.0 }
  0xfe   :  { %718 = vset.pattern.permute.xlu2 %v770_v3  ;;  %619 = vst.msk [vmem:[#allocation3] sm:$0xff] %vm22_vm1, %v617_v47  ;;  %v53_v3 = vld [vmem:[%s1204_s0 + $0xe8] sm:$0xff] }
  0xff   :  { %v503_v23 = vrot.slane %v502_v48, 4 }
 0x101   :  { %411 = vperm.xlu1 %726, %v829_v15   ;;  %v504_v18 = vadd.f32 %v503_v23, %v502_v48 }
 0x103   :  { %v505_v24 = vrot.slane %v504_v18, 2 }
 0x105   :  { %v624_v49 = vld [vmem:[#allocation3] sm:$0xff]  ;;  %v506_v42 = vadd.f32 %v505_v24, %v504_v18 }
 0x106   :  { %356 = vperm.xlu2 %718, %v860_v25   ;;  %627 = vperm.xlu0 %732, %v624_v49  }
 0x107   :  { %v507_v32 = vrot.slane %v506_v42, 1 }
 0x108   :  { %v265_v53 = vpop.permute.xlu2 %264 }
 0x109   :  { %v454_v55 = vmul.f32 %v265_v53, %v53_v3  ;;  %729 = vset.pattern.permute.xlu1 %v789_v7 }
 0x10b   :  { %v535_v56 = vadd.f32 %v454_v55, %v453_v51 }
 0x10d   :  { %v980_v58 = vadd.f32 %v535_v56, %v455_v54  ;;  %v66_v56 = vld [vmem:[%s1204_s0 + $0x150] sm:$0xff] }
 0x10e   :  { %399 = vperm.xlu2 %718, %v829_v15  }
 0x110   :  { %v308_v60 = vpop.permute.xlu2 %307 }
 0x111   :  { %v461_v30 = vmul.f32 %v308_v60, %v60_v59  ;;  %374 = vperm.xlu1 %729, %v860_v25  }
 0x113   :  { %v994_v63 = vadd.f32 %v461_v30, %v460_v19  ;;  %v105_v0 = vpop.permute.xlu1 %104 }
 0x114   :  { %v428_v14 = vmul.f32 %v105_v0, %v27_v61 }
 0x116   :  { %v484_v1 = vadd.f32 %v900_v52, %v428_v14  ;;  %722 = vset.pattern.permute.xlu2 %v813_v13  ;;  %v48_v14 = vld [vmem:[%s1204_s0 + $0xc0] sm:$0xff] }
 0x118   :  { %v485_v6 = vadd.f32 %v484_v1, %v429_v17  ;;  %v49_v17 = vld [vmem:[%s1204_s0 + $0xc8] sm:$0xff] }
 0x119   :  { %731 = vset.pattern.permute.xlu1 %v792_v8 }
 0x11a   :  { %v486_v34 = vadd.f32 %v485_v6, %v430_v27  ;;  %v51_v27 = vld [vmem:[%s1204_s0 + $0xd8] sm:$0x3] }
 0x11b   :  { %v191_v13 = vpop.permute.xlu1 %190 }
 0x11c   :  { %v489_v52 = vadd.f32 %v488_v2, %v486_v34  ;;  %v442_v35 = vmul.f32 %v191_v13, %v41_v29 }
 0x11e   :  { %v490_v38 = vrot.slane %v489_v52, 4  ;;  %v511_v39 = vadd.f32 %v893_v46, %v442_v35  ;;  %362 = vperm.xlu2 %722, %v860_v25   ;;  %v508_v25 = vadd.f32 %v507_v32, %v506_v42  ;;  %v1064_v42 = vpop.permute.xlu0 %325 }
 0x120   :  { %v491_v44 = vadd.f32 %v490_v38, %v489_v52  ;;  %v512_v45 = vadd.f32 %v511_v39, %v443_v37  ;;  %v345_v3 = vpop.permute.xlu2 %344 }
 0x121   :  { %423 = vperm.xlu1 %731, %v829_v15   ;;  %v467_v60 = vmul.f32 %v345_v3, %v66_v56  ;;  %v659_v3 = vld [vmem:[%s1206_s2 + $0x70] sm:$0xff]  ;;  %v658_v56 = vld [vmem:[%s1206_s2 + $0x68] sm:$0xff] }
 0x122   :  { %v492_v47 = vrot.slane %v491_v44, 2  ;;  %v513_v48 = vadd.f32 %v512_v45, %v444_v41 }
 0x123   :  { %v234_v0 = vpop.permute.xlu1 %233 }
 0x124   :  { %v493_v4 = vadd.f32 %v492_v47, %v491_v44  ;;  %v515_v49 = vadd.f32 %v514_v31, %v513_v48  ;;  %v449_v1 = vmul.f32 %v234_v0, %v48_v14  ;;  %v56_v47 = vld [vmem:[%s1204_s0 + $0x100] sm:$0xff]  ;;  %v58_v48 = vld [vmem:[%s1204_s0 + $0x110] sm:$0x3] }
 0x126   :  { %v494_v50 = vrot.slane %v493_v4, 1  ;;  %v516_v46 = vrot.slane %v515_v49, 4  ;;  %405 = vperm.xlu2 %722, %v829_v15   ;;  %v524_v21 = vadd.f32 %v958_v43, %v449_v1  ;;  %v72_v1 = vld [vmem:[%s1204_s0 + $0x180] sm:$0x3] }
 0x128   :  { %v495_v5 = vadd.f32 %v494_v50, %v493_v4  ;;  %v517_v28 = vadd.f32 %v516_v46, %v515_v49  ;;  %v295_v49 = vpop.permute.xlu0 %294  ;;  %v68_v50 = vld [vmem:[%s1204_s0 + $0x160] sm:$0xff] }
 0x129   :  { %v459_v46 = vmul.f32 %v295_v49, %v58_v48  ;;  %v648_v49 = vld [vmem:[%s1206_s2 + $0x18] sm:$0xff] }
 0x12a   :  { %v518_v51 = vrot.slane %v517_v28, 2  ;;  %v596_v53 = vsel %vm595_vm3, %v508_v25, %v495_v5  ;;  %v57_v25 = vld [vmem:[%s1204_s0 + $0x108] sm:$0xff]  ;;  %v660_v5 = vld [vmem:[%s1206_s2 + $0x78] sm:$0xff] }
 0x12b   :  { %665 = vmatpush.msra.mxu0 %v660_v5  ;;  %v646_v5 = vld [vmem:[%s1206_s2 + $0x8] sm:$0xff] }
 0x12c   :  { %v519_v54 = vadd.f32 %v518_v51, %v517_v28  ;;  %v69_v28 = vld [vmem:[%s1204_s0 + $0x168] sm:$0xff] }
 0x12d   :  { %666 = vmatpush.msra.mxu0 %v659_v3  ;;  %v74_v3 = vld [vmem:[%s1204_s0 + $0x190] sm:$0xff] }
 0x12e   :  { %v520_v55 = vrot.slane %v519_v54, 1  ;;  %725 = vset.pattern.permute.xlu2 %v789_v7 }
 0x12f   :  { %667 = vmatpush.msra.mxu0 %v658_v56  ;;  %v75_v56 = vld [vmem:[%s1204_s0 + $0x198] sm:$0xff] }
 0x130   :  { %v521_v59 = vadd.f32 %v520_v55, %v519_v54  ;;  %v351_v19 = vpop.permute.xlu2 %350  ;;  %v540_v55 = vsel %vm487_vm2, %v459_v46, 0.0  ;;  %v65_v46 = vld [vmem:[%s1204_s0 + $0x148] sm:$0x3] }
 0x131   :  { %v468_v30 = vmul.f32 %v351_v19, %v67_v57  ;;  %v70_v19 = vld [vmem:[%s1204_s0 + $0x170] sm:$0xff] }
 0x132   :  { %v598_v61 = vsel %vm597_vm4, %v521_v59, %v596_v53 }
 0x133   :  { %v1036_v62 = vadd.f32 %v468_v30, %v467_v60  ;;  %v240_v12 = vpop.permute.xlu1 %239  ;;  %v657_v60 = vld [vmem:[%s1206_s2 + $0x60] sm:$0xff] }
 0x134   :  { %668 = vmatpush.msra.mxu0 %v657_v60 }
 0x136   :  { %288 = vperm.xlu2 %725, %v798_v9   ;;  %v50_v9 = vld [vmem:[%s1204_s0 + $0xd0] sm:$0xff] }
 0x13b   :  { %v283_v23 = vpop.permute.xlu1 %282 }
 0x13c   :  { %v457_v32 = vmul.f32 %v283_v23, %v56_v47  ;;  %v656_v23 = vld [vmem:[%s1206_s2 + $0x58] sm:$0xff] }
 0x13d   :  { %669 = vmatpush.msra.mxu0 %v656_v23 }
 0x13e   :  { %331 = vperm.xlu2 %725, %v804_v10  }
 0x140   :  { %v1056_v29 = vpop.permute.xlu2 %387 }
 0x146   :  { %728 = vset.pattern.permute.xlu2 %v792_v8  ;;  %v450_v8 = vmul.f32 %v240_v12, %v49_v17  ;;  %v71_v12 = vld [vmem:[%s1204_s0 + $0x178] sm:$0xff]  ;;  %v381_v17 = vpop.permute.xlu0 %380 }
 0x148   :  { %v525_v18 = vadd.f32 %v524_v21, %v450_v8  ;;  %v61_v8 = vld [vmem:[%s1204_s0 + $0x128] sm:$0xff] }
 0x14b   :  { %v246_v16 = vpop.permute.xlu1 %245 }
 0x14e   :  { %337 = vperm.xlu2 %728, %v804_v10   ;;  %v451_v10 = vmul.f32 %v246_v16, %v50_v9 }
 0x150   :  { %v526_v2 = vadd.f32 %v525_v18, %v451_v10  ;;  %v277_v24 = vpop.permute.xlu2 %276  ;;  %v654_v18 = vld [vmem:[%s1206_s2 + $0x48] sm:$0xff] }
 0x156   :  { %730 = vset.pattern.permute.xlu2 %v789_v7 }
 0x15b   :  { %v252_v6 = vpop.permute.xlu1 %251 }
 0x15c   :  { %v452_v34 = vmul.f32 %v252_v6, %v51_v27  ;;  %v473_v27 = vmul.f32 %v381_v17, %v72_v1 }
 0x15e   :  { %v527_v20 = vsel %vm487_vm2, %v452_v34, 0.0  ;;  %417 = vperm.xlu2 %730, %v829_v15   ;;  %v55_v15 = vld [vmem:[%s1204_s0 + $0xf8] sm:$0xff] }
 0x15f   :  { %v528_v13 = vadd.f32 %v527_v20, %v526_v2  ;;  %v456_v45 = vmul.f32 %v277_v24, %v55_v15  ;;  %v462_v2 = vmul.f32 %v874_v33, %v61_v8  ;;  %v653_v20 = vld [vmem:[%s1206_s2 + $0x40] sm:$0xff]  ;;  %v566_v24 = vsel %vm487_vm2, %v473_v27, 0.0 }
 0x160   :  { %v357_v37 = vpop.permute.xlu2 %356 }
 0x161   :  { %v529_v7 = vrot.slane %v528_v13, 4  ;;  %v537_v4 = vadd.f32 %v980_v58, %v456_v45  ;;  %v469_v51 = vmul.f32 %v357_v37, %v68_v50  ;;  %v651_v37 = vld [vmem:[%s1206_s2 + $0x30] sm:$0xff]  ;;  %v650_v45 = vld [vmem:[%s1206_s2 + $0x28] sm:$0xff] }
 0x163   :  { %v530_v22 = vadd.f32 %v529_v7, %v528_v13  ;;  %v538_v54 = vadd.f32 %v537_v4, %v457_v32  ;;  %v562_v30 = vadd.f32 %v1036_v62, %v469_v51  ;;  %v655_v62 = vld [vmem:[%s1206_s2 + $0x50] sm:$0xff]  ;;  %v649_v32 = vld [vmem:[%s1206_s2 + $0x20] sm:$0xff]  ;;  %v73_v51 = vld [vmem:[%s1204_s0 + $0x188] sm:$0xff] }
 0x164   :  { %670 = vmatpush.msra.mxu0 %v655_v62  ;;  %v62_v13 = vld [vmem:[%s1204_s0 + $0x130] sm:$0xff]  ;;  %v474_v60 = vmul.f32 %v1056_v29, %v73_v51  ;;  %v79_v62 = vld [vmem:[%s1204_s0 + $0x1b8] sm:$0x3] }
 0x165   :  { %v531_v43 = vrot.slane %v530_v22, 2  ;;  %v463_v33 = vmul.f32 %v935_v26, %v62_v13  ;;  %v64_v26 = vld [vmem:[%s1204_s0 + $0x140] sm:$0xff] }
 0x166   :  { %671 = vmatpush.msra.mxu0 %v654_v18 }
 0x167   :  { %v532_v52 = vadd.f32 %v531_v43, %v530_v22  ;;  %v652_v43 = vld [vmem:[%s1206_s2 + $0x38] sm:$0xff] }
 0x168   :  { %v1062_v39 = vpop.permute.xlu2 %399  ;;  %672 = vmatpush.msra.mxu0 %v653_v20 }
 0x169   :  { %v533_v35 = vrot.slane %v532_v52, 1 }
 0x16a   :  { %673 = vmatpush.msra.mxu0 %v652_v43 }
 0x16b   :  { %v534_v36 = vadd.f32 %v533_v35, %v532_v52  ;;  %v369_v41 = vpop.permute.xlu1 %368  ;;  %v549_v35 = vadd.f32 %v994_v63, %v462_v2 }
 0x16c   :  { %v471_v14 = vmul.f32 %v369_v41, %v70_v19  ;;  %674 = vmatpush.msra.mxu0 %v651_v37  ;;  %v475_v19 = vmul.f32 %v924_v11, %v74_v3  ;;  %v77_v11 = vld [vmem:[%s1204_s0 + $0x1a8] sm:$0xff] }
 0x16d   :  { %v1060_v38 = vsel %vm599_vm5, %v534_v36, %v598_v61  ;;  %v550_v48 = vadd.f32 %v549_v35, %v463_v33 }
 0x16e   :  { %675 = vmatpush.msra.mxu0 %v650_v45 }
 0x170   :  { %676 = vmatpush.msra.mxu0 %v649_v32 }
 0x172   :  { %677 = vmatpush.msra.mxu0 %v648_v49 }
 0x173   :  { %v1077_v31 = vpop.permute.xlu1 %411 }
 0x178   :  { %v363_v40 = vpop.permute.xlu2 %362 }
 0x179   :  { %v470_v57 = vmul.f32 %v363_v40, %v69_v28  ;;  %v63_v40 = vld [vmem:[%s1204_s0 + $0x138] sm:$0xff] }
 0x17a   :  { %v464_v47 = vmul.f32 %v1064_v42, %v63_v40 }
 0x17b   :  { %v563_v16 = vadd.f32 %v562_v30, %v470_v57  ;;  %v628_v57 = vpop.permute.xlu0 %627 }
 0x17c   :  { %v551_v42 = vadd.f32 %v550_v48, %v464_v47  ;;  %734 = vrcp.f32 %v628_v57  ;;  %vm635_vm9 = vweird.f32 %v628_v57 }
 0x17d   :  { %v564_v6 = vadd.f32 %v563_v16, %v471_v14  ;;  %v574_v14 = vadd.f32 %v475_v19, %v474_v60 }
 0x180   :  { %v1069_v44 = vpop.permute.xlu2 %405 }
 0x183   :  { %v375_v0 = vpop.permute.xlu1 %374 }
 0x184   :  { %v472_v21 = vmul.f32 %v375_v0, %v71_v12  ;;  %v476_v12 = vmul.f32 %v1062_v39, %v75_v56  ;;  %v478_v39 = vmul.f32 %v1077_v31, %v77_v11 }
 0x186   :  { %v565_v7 = vadd.f32 %v564_v6, %v472_v21  ;;  %v575_v1 = vadd.f32 %v574_v14, %v476_v12  ;;  %v735_v21 = vpop.eup %734 }
 0x187   :  { %vm636_vm10 = vweird.f32 %v735_v21 }
 0x188   :  { %v567_v41 = vadd.f32 %v566_v24, %v565_v7  ;;  %vm637_vm11 = vmor %vm635_vm9, %vm636_vm10 }
 0x18a   :  { %v568_v4 = vrot.slane %v567_v41, 4 }
 0x18c   :  { %v569_v28 = vadd.f32 %v568_v4, %v567_v41  ;;  %v641_v41 = vand.u32 2147483648, %v628_v57 }
 0x18e   :  { %v570_v30 = vrot.slane %v569_v28, 2  ;;  %v642_v48 = vor.u32 1.1754944e-38, %v641_v41 }
 0x190   :  { %v289_v58 = vpop.permute.xlu2 %288  ;;  %v571_v17 = vadd.f32 %v570_v30, %v569_v28 }
 0x191   :  { %v458_v53 = vmul.f32 %v289_v58, %v57_v25 }
 0x192   :  { %v572_v27 = vrot.slane %v571_v17, 1 }
 0x193   :  { %v539_v59 = vadd.f32 %v538_v54, %v458_v53  ;;  %v645_v54 = vld [vmem:[%s1206_s2] sm:$0xff] }
 0x195   :  { %v541_v61 = vadd.f32 %v540_v55, %v539_v59 }
 0x197   :  { %v542_v9 = vrot.slane %v541_v61, 4 }
 0x198   :  { %v332_v36 = vpop.permute.xlu2 %331 }
 0x199   :  { %v543_v10 = vadd.f32 %v542_v9, %v541_v61  ;;  %v465_v50 = vmul.f32 %v332_v36, %v64_v26  ;;  %v76_v61 = vld [vmem:[%s1204_s0 + $0x1a0] sm:$0xff]  ;;  %v424_v9 = vpop.permute.xlu1 %423  ;;  %v639_v26 = vand.u32 2147483647, %v628_v57 }
 0x19a   :  { %v477_v16 = vmul.f32 %v1069_v44, %v76_v61  ;;  %v78_v44 = vld [vmem:[%s1204_s0 + $0x1b0] sm:$0xff]  ;;  %v480_v6 = vmul.f32 %v424_v9, %v79_v62 }
 0x19b   :  { %v544_v34 = vrot.slane %v543_v10, 2  ;;  %v552_v53 = vadd.f32 %v551_v42, %v465_v50  ;;  %vm640_vm13 = vcmp.eq.f32.partialorder %v639_v26, 8.507059e+37 }
 0x19c   :  { %v579_v24 = vsel %vm487_vm2, %v480_v6, 0.0 }
 0x19d   :  { %v545_v22 = vadd.f32 %v544_v34, %v543_v10  ;;  %v576_v10 = vadd.f32 %v575_v1, %v477_v16  ;;  %v631_v34 = vmul.f32 %v735_v21, %v628_v57 }
 0x19f   :  { %v546_v52 = vrot.slane %v545_v22, 1  ;;  %v577_v7 = vadd.f32 %v576_v10, %v478_v39  ;;  %v632_v33 = vsub.f32 1.0, %v631_v34 }
 0x1a1   :  { %v547_v15 = vadd.f32 %v546_v52, %v545_v22  ;;  %v573_v22 = vadd.f32 %v572_v27, %v571_v17  ;;  %v633_v37 = vmul.f32 %v735_v21, %v632_v33 }
 0x1a3   :  { %v602_v63 = vsel %vm601_vm6, %v547_v15, %v1060_v38  ;;  %v647_v38 = vld [vmem:[%s1206_s2 + $0x10] sm:$0xff]  ;;  %v634_v45 = vadd.f32 %v735_v21, %v633_v37 }
 0x1a4   :  { %678 = vmatpush.msra.mxu0 %v647_v38  ;;  %v733_v38 = vld [vmem:[%s1205_s3] ss:$0 sm:$0xff] }
 0x1a5   :  { %v638_v4 = vsel %vm637_vm11, %v735_v21, %v634_v45 }
 0x1a6   :  { %679 = vmatpush.msra.mxu0 %v646_v5  ;;  %v643_v50 = vsel %vm640_vm13, %v642_v48, %v638_v4 }
 0x1a8   :  { %v338_v25 = vpop.permute.xlu2 %337  ;;  %680 = vmatpush.msra.mxu0 %v645_v54 }
 0x1a9   :  { %v466_v58 = vmul.f32 %v338_v25, %v65_v46 }
 0x1ab   :  { %v553_v55 = vsel %vm487_vm2, %v466_v58, 0.0 }
 0x1ac   :  { %v554_v59 = vadd.f32 %v553_v55, %v552_v53 }
 0x1ae   :  { %v555_v0 = vrot.slane %v554_v59, 4 }
 0x1b0   :  { %v556_v23 = vadd.f32 %v555_v0, %v554_v59 }
 0x1b2   :  { %v557_v29 = vrot.slane %v556_v23, 2 }
 0x1b4   :  { %v558_v8 = vadd.f32 %v557_v29, %v556_v23 }
 0x1b6   :  { %v559_v18 = vrot.slane %v558_v8, 1 }
 0x1b8   :  { %v560_v2 = vadd.f32 %v559_v18, %v558_v8  ;;  %v418_v20 = vpop.permute.xlu2 %417 }
 0x1b9   :  { %v479_v13 = vmul.f32 %v418_v20, %v78_v44 }
 0x1ba   :  { %v604_v43 = vsel %vm603_vm7, %v560_v2, %v602_v63 }
 0x1bb   :  { %v578_v31 = vadd.f32 %v577_v7, %v479_v13  ;;  %v606_v52 = vsel %vm605_vm8, %v573_v22, %v604_v43 }
 0x1bd   :  { %v580_v35 = vadd.f32 %v579_v24, %v578_v31 }
 0x1bf   :  { %v581_v36 = vrot.slane %v580_v35, 4 }
 0x1c1   :  { %v582_v40 = vadd.f32 %v581_v36, %v580_v35 }
 0x1c3   :  { %v583_v15 = vrot.slane %v582_v40, 2 }
 0x1c5   :  { %v584_v47 = vadd.f32 %v583_v15, %v582_v40 }
 0x1c7   :  { %v585_v32 = vrot.slane %v584_v47, 1 }
 0x1c9   :  { %v586_v63 = vadd.f32 %v585_v32, %v584_v47 }
 0x1cb   :  { %v608_v49 = vsel %vm607_vm12, %v586_v63, %v606_v52 }
 0x1cc   :  { %v644_v46 = vmul.f32 %v643_v50, %v608_v49 }
 0x1ce   :  { %681 = vmatmul.f32.vlgmr.msra.gmra.mxu0 %v644_v46 }
 0x24b   :  { %v682_v42 = vpop.f32.mrf.mxu0 }
 0x24c   :  { %v683_v25 = vadd.f32 %v733_v38, %v682_v42 }
 0x24e   :  { %686 = vst.msk [vmem:[%s1207_s4] sm:$0xff] %vm685_vm14, %v683_v25 }

</bundles_post_ra>
